<compile_context>
chip_gen: v7x
topology: tpu7x:2x2x1
jax: 0.10.0
libtpu: 0.0.40
codegen_flags: <defaults>
</compile_context>

<pallas_src>
import functools
import math

import numpy as np
import jax
import jax.numpy as jnp
from jax.experimental import pallas as pl
from jax.experimental.pallas import tpu as pltpu

MODEL_DIM = 32
NUM_HEADS = 8
HEAD_DIM = MODEL_DIM // NUM_HEADS


def _attn_kernel(x_ref, wqkv_ref, wout_ref, bout_ref, o_ref, *,
                 seq_len, num_heads):
    # x_ref:    (TB*S, D)  bf16   TB token slabs, row-flattened
    # wqkv_ref: (D, 3D)    bf16   qkv.weight.T  (Linear has no bias)
    # wout_ref: (D, D)     bf16   out_proj.weight.T
    # bout_ref: (1, D)     f32    out_proj.bias
    # o_ref:    (TB*S, D)  f32
    R, D = x_ref.shape
    S = seq_len
    TB = R // S
    H = num_heads
    hd = D // H
    scale = 1.0 / float(np.sqrt(hd))

    # --- QKV projection: one (R, D) x (D, 3D) MXU matmul, f32 accumulation.
    qkv_f32 = jnp.dot(x_ref[...], wqkv_ref[...],
                      preferred_element_type=jnp.float32)          # (R, 3D) f32
    # bf16 copy feeds the attention MXU ops; softmax stays in f32 below.
    qkv = qkv_f32.astype(jnp.bfloat16).reshape(TB, S, 3 * D)
    q = qkv[:, :, 0 * D:1 * D]                                     # (TB, S, D)
    k = qkv[:, :, 1 * D:2 * D]
    v = qkv[:, :, 2 * D:3 * D]

    # --- Per-head scaled-dot-product attention, batched over the TB slabs.
    head_outs = []
    for h in range(H):                                             # static unroll
        sl = slice(h * hd, (h + 1) * hd)
        qh, kh, vh = q[:, :, sl], k[:, :, sl], v[:, :, sl]         # (TB, S, hd)
        s = jnp.einsum('bqd,bkd->bqk', qh, kh,
                       preferred_element_type=jnp.float32) * scale  # (TB,S,S) f32
        s = s - jnp.max(s, axis=-1, keepdims=True)                 # stable softmax
        p = jnp.exp(s)
        l = jnp.sum(p, axis=-1, keepdims=True)                     # (TB, S, 1)
        # Unnormalized PV on the MXU, then scale the small (TB,S,hd) result by
        # 1/l from the EUP (cheaper than dividing the (TB,S,S) probabilities).
        oh = jnp.einsum('bqk,bkd->bqd', p.astype(jnp.bfloat16), vh,
                        preferred_element_type=jnp.float32)         # (TB, S, hd)
        head_outs.append(oh * pl.reciprocal(l, approx=True))

    attn = jnp.concatenate(head_outs, axis=-1).reshape(R, D)       # (R, D) f32

    # --- Output projection (+bias), f32 accumulation.
    out = jnp.dot(attn.astype(jnp.bfloat16), wout_ref[...],
                  preferred_element_type=jnp.float32) + bout_ref[...]
    o_ref[...] = out.astype(o_ref.dtype)


def _choose_block_batch(bg, s):
    """Slabs per grid step: target ~256 rows (TB*S), keep >=2 grid steps."""
    target_rows = 256
    tb = max(1, min(bg, target_rows // max(1, s)))
    if bg > 1:
        tb = min(tb, (bg + 1) // 2)        # >= 2 steps -> both v7x TCs get work
    # Keep the block's sublane dim (tb*s) 8-aligned unless the block covers the
    # whole array (full-array blocks are always legal).
    g = 8 // math.gcd(8, s)
    if tb % g:
        tb = ((tb + g - 1) // g) * g
    if tb >= bg:
        tb = bg
    return tb


def attention_layer(x, w_qkv_t, w_out_t, b_out, *, num_heads=NUM_HEADS, dim=2):
    """Pallas implementation of AttentionLayer.forward(x, dim)."""
    x = jnp.swapaxes(x, dim, 2)            # glue (no-op for default dim=2)
    lead = x.shape[:-2]
    S, D = x.shape[-2], x.shape[-1]
    BG = int(np.prod(lead)) if lead else 1

    TB = _choose_block_batch(BG, S)
    NB = -(-BG // TB)                      # ceil(BG / TB)
    pad = NB * TB - BG

    xf = x.reshape(BG, S, D)
    if pad:
        xf = jnp.concatenate([xf, jnp.zeros((pad, S, D), xf.dtype)], axis=0)
    # Flat (rows, D) layout: each grid step gets an 8-sublane-aligned (TB*S, D)
    # slab; MXU operands are cast to bf16 here to also halve the input DMA.
    x_rows = xf.reshape(NB * TB * S, D).astype(jnp.bfloat16)

    kernel = functools.partial(_attn_kernel, seq_len=S, num_heads=num_heads)
    out = pl.pallas_call(
        kernel,
        out_shape=jax.ShapeDtypeStruct((NB * TB * S, D), x.dtype),
        grid_spec=pltpu.PrefetchScalarGridSpec(
            num_scalar_prefetch=0,
            grid=(NB,),
            in_specs=[
                pl.BlockSpec((TB * S, D), lambda i: (i, 0)),
                pl.BlockSpec((D, 3 * D), lambda i: (0, 0)),
                pl.BlockSpec((D, D), lambda i: (0, 0)),
                pl.BlockSpec((1, D), lambda i: (0, 0)),
            ],
            out_specs=pl.BlockSpec((TB * S, D), lambda i: (i, 0)),
        ),
        compiler_params=pltpu.CompilerParams(
            dimension_semantics=("parallel",)),
    )(x_rows,
      w_qkv_t.astype(jnp.bfloat16),
      w_out_t.astype(jnp.bfloat16),
      b_out.reshape(1, D).astype(jnp.float32))

    out = out.reshape(NB * TB, S, D)[:BG].reshape(*lead, S, D)
    return jnp.swapaxes(out, dim, 2)


def attention_layer_reference(x, w_qkv_t, w_out_t, b_out, *,
                              num_heads=NUM_HEADS, dim=2):
    """Pure-JAX f32 reference mirroring the PyTorch forward exactly."""
    x = jnp.swapaxes(x, dim, 2)
    D = x.shape[-1]
    hd = D // num_heads
    qkv = x @ w_qkv_t
    q, k, v = jnp.split(qkv, 3, axis=-1)                    # (..., S, D)

    def to_heads(t):                                         # (..., H, S, hd)
        t = t.reshape(*t.shape[:-1], num_heads, hd)
        return jnp.moveaxis(t, -2, -3)

    qs, ks, vs = to_heads(q), to_heads(k), to_heads(v)
    scores = jnp.einsum('...qd,...kd->...qk', qs, ks) / np.sqrt(hd)
    p = jax.nn.softmax(scores, axis=-1)
    o = jnp.einsum('...qk,...kd->...qd', p, vs)              # (..., H, S, hd)
    o = jnp.moveaxis(o, -3, -2)                              # (..., S, H, hd)
    o = o.reshape(*o.shape[:-2], D)
    o = o @ w_out_t + b_out
    return jnp.swapaxes(o, dim, 2)


if __name__ == "__main__":
    key = jax.random.PRNGKey(0)
    kx, kqkv, kw, kb, kx2 = jax.random.split(key, 5)

    B, G, S, D = 2, 3, 8, MODEL_DIM          # input: (B, G, S, model_dim)
    x = jax.random.normal(kx, (B, G, S, D), dtype=jnp.float32)

    # Deterministic parameter init (PyTorch Linear-style uniform bounds).
    bound = 1.0 / np.sqrt(D)
    w_qkv_t = jax.random.uniform(kqkv, (D, 3 * D), jnp.float32, -bound, bound)
    w_out_t = jax.random.uniform(kw, (D, D), jnp.float32, -bound, bound)
    b_out = jax.random.uniform(kb, (D,), jnp.float32, -bound, bound)

    out = attention_layer(x, w_qkv_t, w_out_t, b_out)
    out = jax.block_until_ready(out)
    ref = attention_layer_reference(x, w_qkv_t, w_out_t, b_out)
    assert out.shape == x.shape, (out.shape, x.shape)
    # bf16 MXU operands (f32 accumulation) -> loosened tolerance vs f32 reference.
    assert jnp.allclose(out, ref, rtol=3e-2, atol=3e-2), "mismatch vs reference"

    # Second check: 3-D input with a batch count that exercises the padding path.
    x2 = jax.random.normal(kx2, (5, S, D), dtype=jnp.float32)
    out2 = jax.block_until_ready(attention_layer(x2, w_qkv_t, w_out_t, b_out))
    ref2 = attention_layer_reference(x2, w_qkv_t, w_out_t, b_out)
    assert out2.shape == x2.shape, (out2.shape, x2.shape)
    assert jnp.allclose(out2, ref2, rtol=3e-2, atol=3e-2), "mismatch (padded case)"

    print("KERNEL_OK")
</pallas_src>

<mosaic_0001>
module attributes {stable_mosaic.version = 11 : i64} {
  func.func @_attn_kernel(%arg0: i32, %arg1: memref<24x32xbf16, #tpu.memory_space<vmem>>, %arg2: memref<32x96xbf16, #tpu.memory_space<vmem>>, %arg3: memref<32x32xbf16, #tpu.memory_space<vmem>>, %arg4: memref<1x32xf32, #tpu.memory_space<vmem>>, %arg5: memref<24x32xf32, #tpu.memory_space<vmem>>) attributes {dimension_semantics = [#tpu.dimension_semantics<parallel>], iteration_bounds = array<i64: 2>, scalar_prefetch = 0 : i64, scratch_operands = 0 : i64, tpu.core_type = #tpu.core_type<tc>, window_params = [{transform_indices = @transform_0, window_bounds = array<i64: 24, 32>}, {pipeline_mode = #tpu.pipeline_mode<synchronous>, transform_indices = @transform_1, window_bounds = array<i64: 32, 96>}, {pipeline_mode = #tpu.pipeline_mode<synchronous>, transform_indices = @transform_2, window_bounds = array<i64: 32, 32>}, {pipeline_mode = #tpu.pipeline_mode<synchronous>, transform_indices = @transform_3, window_bounds = array<i64: 1, 32>}, {transform_indices = @transform_4, window_bounds = array<i64: 24, 32>}]} {
    %c0 = arith.constant 0 : index
    %c0_0 = arith.constant 0 : index
    %0 = vector.load %arg1[%c0, %c0_0] : memref<24x32xbf16, #tpu.memory_space<vmem>>, vector<24x32xbf16>
    %c0_1 = arith.constant 0 : index
    %c0_2 = arith.constant 0 : index
    %1 = vector.load %arg2[%c0_1, %c0_2] : memref<32x96xbf16, #tpu.memory_space<vmem>>, vector<32x96xbf16>
    %cst = arith.constant dense<0.000000e+00> : vector<24x96xf32>
    %2 = tpu.matmul %0, %1, %cst {dimension_numbers = #tpu.dot_dimension_numbers<[1], [0], [0], [1], [0, 0, 1, 1], [], []>} : vector<24x32xbf16>, vector<32x96xbf16>, vector<24x96xf32> -> vector<24x96xf32>
    %3 = arith.truncf %2 : vector<24x96xf32> to vector<24x96xbf16>
    %4 = vector.shape_cast %3 : vector<24x96xbf16> to vector<3x8x96xbf16>
    %5 = vector.extract_strided_slice %4 {offsets = [0, 0, 0], sizes = [3, 8, 32], strides = [1, 1, 1]} : vector<3x8x96xbf16> to vector<3x8x32xbf16>
    %6 = vector.extract_strided_slice %4 {offsets = [0, 0, 32], sizes = [3, 8, 32], strides = [1, 1, 1]} : vector<3x8x96xbf16> to vector<3x8x32xbf16>
    %7 = vector.extract_strided_slice %4 {offsets = [0, 0, 64], sizes = [3, 8, 32], strides = [1, 1, 1]} : vector<3x8x96xbf16> to vector<3x8x32xbf16>
    %8 = vector.extract_strided_slice %5 {offsets = [0, 0, 0], sizes = [3, 8, 4], strides = [1, 1, 1]} : vector<3x8x32xbf16> to vector<3x8x4xbf16>
    %9 = vector.extract_strided_slice %6 {offsets = [0, 0, 0], sizes = [3, 8, 4], strides = [1, 1, 1]} : vector<3x8x32xbf16> to vector<3x8x4xbf16>
    %10 = vector.extract_strided_slice %7 {offsets = [0, 0, 0], sizes = [3, 8, 4], strides = [1, 1, 1]} : vector<3x8x32xbf16> to vector<3x8x4xbf16>
    "tpu.trace_start"() <{level = 10 : i32, message = "bqd,bkd->bqk"}> : () -> ()
    %cst_3 = arith.constant dense<0.000000e+00> : vector<3x8x8xf32>
    %11 = tpu.matmul %8, %9, %cst_3 {dimension_numbers = #tpu.dot_dimension_numbers<[2], [2], [1], [1], [0, 0, 0, 1, 1, 1], [0], [0]>} : vector<3x8x4xbf16>, vector<3x8x4xbf16>, vector<3x8x8xf32> -> vector<3x8x8xf32>
    "tpu.trace_stop"() : () -> ()
    %cst_4 = arith.constant 5.000000e-01 : f32
    %12 = vector.broadcast %cst_4 : f32 to vector<3x8x8xf32>
    %13 = arith.mulf %11, %12 : vector<3x8x8xf32>
    %cst_5 = arith.constant dense<0xFF800000> : vector<3x8xf32>
    %14 = vector.multi_reduction <maximumf>, %13, %cst_5 [2] : vector<3x8x8xf32> to vector<3x8xf32>
    %15 = vector.shape_cast %14 : vector<3x8xf32> to vector<3x8x1xf32>
    %16 = vector.broadcast %15 : vector<3x8x1xf32> to vector<3x8x8xf32>
    %17 = arith.subf %13, %16 : vector<3x8x8xf32>
    %18 = math.exp %17 : vector<3x8x8xf32>
    %cst_6 = arith.constant dense<0.000000e+00> : vector<3x8xf32>
    %19 = vector.multi_reduction <add>, %18, %cst_6 [2] : vector<3x8x8xf32> to vector<3x8xf32>
    %20 = vector.shape_cast %19 : vector<3x8xf32> to vector<3x8x1xf32>
    %21 = arith.truncf %18 : vector<3x8x8xf32> to vector<3x8x8xbf16>
    "tpu.trace_start"() <{level = 10 : i32, message = "bqk,bkd->bqd"}> : () -> ()
    %cst_7 = arith.constant dense<0.000000e+00> : vector<3x8x4xf32>
    %22 = tpu.matmul %21, %10, %cst_7 {dimension_numbers = #tpu.dot_dimension_numbers<[2], [1], [1], [2], [0, 0, 0, 1, 1, 2], [0], [0]>} : vector<3x8x8xbf16>, vector<3x8x4xbf16>, vector<3x8x4xf32> -> vector<3x8x4xf32>
    "tpu.trace_stop"() : () -> ()
    %23 = tpu.reciprocal %20 {approx = true} : vector<3x8x1xf32> -> vector<3x8x1xf32>
    %24 = vector.broadcast %23 : vector<3x8x1xf32> to vector<3x8x4xf32>
    %25 = arith.mulf %22, %24 : vector<3x8x4xf32>
    %26 = vector.extract_strided_slice %5 {offsets = [0, 0, 4], sizes = [3, 8, 4], strides = [1, 1, 1]} : vector<3x8x32xbf16> to vector<3x8x4xbf16>
    %27 = vector.extract_strided_slice %6 {offsets = [0, 0, 4], sizes = [3, 8, 4], strides = [1, 1, 1]} : vector<3x8x32xbf16> to vector<3x8x4xbf16>
    %28 = vector.extract_strided_slice %7 {offsets = [0, 0, 4], sizes = [3, 8, 4], strides = [1, 1, 1]} : vector<3x8x32xbf16> to vector<3x8x4xbf16>
    "tpu.trace_start"() <{level = 10 : i32, message = "bqd,bkd->bqk"}> : () -> ()
    %cst_8 = arith.constant dense<0.000000e+00> : vector<3x8x8xf32>
    %29 = tpu.matmul %26, %27, %cst_8 {dimension_numbers = #tpu.dot_dimension_numbers<[2], [2], [1], [1], [0, 0, 0, 1, 1, 1], [0], [0]>} : vector<3x8x4xbf16>, vector<3x8x4xbf16>, vector<3x8x8xf32> -> vector<3x8x8xf32>
    "tpu.trace_stop"() : () -> ()
    %cst_9 = arith.constant 5.000000e-01 : f32
    %30 = vector.broadcast %cst_9 : f32 to vector<3x8x8xf32>
    %31 = arith.mulf %29, %30 : vector<3x8x8xf32>
    %cst_10 = arith.constant dense<0xFF800000> : vector<3x8xf32>
    %32 = vector.multi_reduction <maximumf>, %31, %cst_10 [2] : vector<3x8x8xf32> to vector<3x8xf32>
    %33 = vector.shape_cast %32 : vector<3x8xf32> to vector<3x8x1xf32>
    %34 = vector.broadcast %33 : vector<3x8x1xf32> to vector<3x8x8xf32>
    %35 = arith.subf %31, %34 : vector<3x8x8xf32>
    %36 = math.exp %35 : vector<3x8x8xf32>
    %cst_11 = arith.constant dense<0.000000e+00> : vector<3x8xf32>
    %37 = vector.multi_reduction <add>, %36, %cst_11 [2] : vector<3x8x8xf32> to vector<3x8xf32>
    %38 = vector.shape_cast %37 : vector<3x8xf32> to vector<3x8x1xf32>
    %39 = arith.truncf %36 : vector<3x8x8xf32> to vector<3x8x8xbf16>
    "tpu.trace_start"() <{level = 10 : i32, message = "bqk,bkd->bqd"}> : () -> ()
    %cst_12 = arith.constant dense<0.000000e+00> : vector<3x8x4xf32>
    %40 = tpu.matmul %39, %28, %cst_12 {dimension_numbers = #tpu.dot_dimension_numbers<[2], [1], [1], [2], [0, 0, 0, 1, 1, 2], [0], [0]>} : vector<3x8x8xbf16>, vector<3x8x4xbf16>, vector<3x8x4xf32> -> vector<3x8x4xf32>
    "tpu.trace_stop"() : () -> ()
    %41 = tpu.reciprocal %38 {approx = true} : vector<3x8x1xf32> -> vector<3x8x1xf32>
    %42 = vector.broadcast %41 : vector<3x8x1xf32> to vector<3x8x4xf32>
    %43 = arith.mulf %40, %42 : vector<3x8x4xf32>
    %44 = vector.extract_strided_slice %5 {offsets = [0, 0, 8], sizes = [3, 8, 4], strides = [1, 1, 1]} : vector<3x8x32xbf16> to vector<3x8x4xbf16>
    %45 = vector.extract_strided_slice %6 {offsets = [0, 0, 8], sizes = [3, 8, 4], strides = [1, 1, 1]} : vector<3x8x32xbf16> to vector<3x8x4xbf16>
    %46 = vector.extract_strided_slice %7 {offsets = [0, 0, 8], sizes = [3, 8, 4], strides = [1, 1, 1]} : vector<3x8x32xbf16> to vector<3x8x4xbf16>
    "tpu.trace_start"() <{level = 10 : i32, message = "bqd,bkd->bqk"}> : () -> ()
    %cst_13 = arith.constant dense<0.000000e+00> : vector<3x8x8xf32>
    %47 = tpu.matmul %44, %45, %cst_13 {dimension_numbers = #tpu.dot_dimension_numbers<[2], [2], [1], [1], [0, 0, 0, 1, 1, 1], [0], [0]>} : vector<3x8x4xbf16>, vector<3x8x4xbf16>, vector<3x8x8xf32> -> vector<3x8x8xf32>
    "tpu.trace_stop"() : () -> ()
    %cst_14 = arith.constant 5.000000e-01 : f32
    %48 = vector.broadcast %cst_14 : f32 to vector<3x8x8xf32>
    %49 = arith.mulf %47, %48 : vector<3x8x8xf32>
    %cst_15 = arith.constant dense<0xFF800000> : vector<3x8xf32>
    %50 = vector.multi_reduction <maximumf>, %49, %cst_15 [2] : vector<3x8x8xf32> to vector<3x8xf32>
    %51 = vector.shape_cast %50 : vector<3x8xf32> to vector<3x8x1xf32>
    %52 = vector.broadcast %51 : vector<3x8x1xf32> to vector<3x8x8xf32>
    %53 = arith.subf %49, %52 : vector<3x8x8xf32>
    %54 = math.exp %53 : vector<3x8x8xf32>
    %cst_16 = arith.constant dense<0.000000e+00> : vector<3x8xf32>
    %55 = vector.multi_reduction <add>, %54, %cst_16 [2] : vector<3x8x8xf32> to vector<3x8xf32>
    %56 = vector.shape_cast %55 : vector<3x8xf32> to vector<3x8x1xf32>
    %57 = arith.truncf %54 : vector<3x8x8xf32> to vector<3x8x8xbf16>
    "tpu.trace_start"() <{level = 10 : i32, message = "bqk,bkd->bqd"}> : () -> ()
    %cst_17 = arith.constant dense<0.000000e+00> : vector<3x8x4xf32>
    %58 = tpu.matmul %57, %46, %cst_17 {dimension_numbers = #tpu.dot_dimension_numbers<[2], [1], [1], [2], [0, 0, 0, 1, 1, 2], [0], [0]>} : vector<3x8x8xbf16>, vector<3x8x4xbf16>, vector<3x8x4xf32> -> vector<3x8x4xf32>
    "tpu.trace_stop"() : () -> ()
    %59 = tpu.reciprocal %56 {approx = true} : vector<3x8x1xf32> -> vector<3x8x1xf32>
    %60 = vector.broadcast %59 : vector<3x8x1xf32> to vector<3x8x4xf32>
    %61 = arith.mulf %58, %60 : vector<3x8x4xf32>
    %62 = vector.extract_strided_slice %5 {offsets = [0, 0, 12], sizes = [3, 8, 4], strides = [1, 1, 1]} : vector<3x8x32xbf16> to vector<3x8x4xbf16>
    %63 = vector.extract_strided_slice %6 {offsets = [0, 0, 12], sizes = [3, 8, 4], strides = [1, 1, 1]} : vector<3x8x32xbf16> to vector<3x8x4xbf16>
    %64 = vector.extract_strided_slice %7 {offsets = [0, 0, 12], sizes = [3, 8, 4], strides = [1, 1, 1]} : vector<3x8x32xbf16> to vector<3x8x4xbf16>
    "tpu.trace_start"() <{level = 10 : i32, message = "bqd,bkd->bqk"}> : () -> ()
    %cst_18 = arith.constant dense<0.000000e+00> : vector<3x8x8xf32>
    %65 = tpu.matmul %62, %63, %cst_18 {dimension_numbers = #tpu.dot_dimension_numbers<[2], [2], [1], [1], [0, 0, 0, 1, 1, 1], [0], [0]>} : vector<3x8x4xbf16>, vector<3x8x4xbf16>, vector<3x8x8xf32> -> vector<3x8x8xf32>
    "tpu.trace_stop"() : () -> ()
    %cst_19 = arith.constant 5.000000e-01 : f32
    %66 = vector.broadcast %cst_19 : f32 to vector<3x8x8xf32>
    %67 = arith.mulf %65, %66 : vector<3x8x8xf32>
    %cst_20 = arith.constant dense<0xFF800000> : vector<3x8xf32>
    %68 = vector.multi_reduction <maximumf>, %67, %cst_20 [2] : vector<3x8x8xf32> to vector<3x8xf32>
    %69 = vector.shape_cast %68 : vector<3x8xf32> to vector<3x8x1xf32>
    %70 = vector.broadcast %69 : vector<3x8x1xf32> to vector<3x8x8xf32>
    %71 = arith.subf %67, %70 : vector<3x8x8xf32>
    %72 = math.exp %71 : vector<3x8x8xf32>
    %cst_21 = arith.constant dense<0.000000e+00> : vector<3x8xf32>
    %73 = vector.multi_reduction <add>, %72, %cst_21 [2] : vector<3x8x8xf32> to vector<3x8xf32>
    %74 = vector.shape_cast %73 : vector<3x8xf32> to vector<3x8x1xf32>
    %75 = arith.truncf %72 : vector<3x8x8xf32> to vector<3x8x8xbf16>
    "tpu.trace_start"() <{level = 10 : i32, message = "bqk,bkd->bqd"}> : () -> ()
    %cst_22 = arith.constant dense<0.000000e+00> : vector<3x8x4xf32>
    %76 = tpu.matmul %75, %64, %cst_22 {dimension_numbers = #tpu.dot_dimension_numbers<[2], [1], [1], [2], [0, 0, 0, 1, 1, 2], [0], [0]>} : vector<3x8x8xbf16>, vector<3x8x4xbf16>, vector<3x8x4xf32> -> vector<3x8x4xf32>
    "tpu.trace_stop"() : () -> ()
    %77 = tpu.reciprocal %74 {approx = true} : vector<3x8x1xf32> -> vector<3x8x1xf32>
    %78 = vector.broadcast %77 : vector<3x8x1xf32> to vector<3x8x4xf32>
    %79 = arith.mulf %76, %78 : vector<3x8x4xf32>
    %80 = vector.extract_strided_slice %5 {offsets = [0, 0, 16], sizes = [3, 8, 4], strides = [1, 1, 1]} : vector<3x8x32xbf16> to vector<3x8x4xbf16>
    %81 = vector.extract_strided_slice %6 {offsets = [0, 0, 16], sizes = [3, 8, 4], strides = [1, 1, 1]} : vector<3x8x32xbf16> to vector<3x8x4xbf16>
    %82 = vector.extract_strided_slice %7 {offsets = [0, 0, 16], sizes = [3, 8, 4], strides = [1, 1, 1]} : vector<3x8x32xbf16> to vector<3x8x4xbf16>
    "tpu.trace_start"() <{level = 10 : i32, message = "bqd,bkd->bqk"}> : () -> ()
    %cst_23 = arith.constant dense<0.000000e+00> : vector<3x8x8xf32>
    %83 = tpu.matmul %80, %81, %cst_23 {dimension_numbers = #tpu.dot_dimension_numbers<[2], [2], [1], [1], [0, 0, 0, 1, 1, 1], [0], [0]>} : vector<3x8x4xbf16>, vector<3x8x4xbf16>, vector<3x8x8xf32> -> vector<3x8x8xf32>
    "tpu.trace_stop"() : () -> ()
    %cst_24 = arith.constant 5.000000e-01 : f32
    %84 = vector.broadcast %cst_24 : f32 to vector<3x8x8xf32>
    %85 = arith.mulf %83, %84 : vector<3x8x8xf32>
    %cst_25 = arith.constant dense<0xFF800000> : vector<3x8xf32>
    %86 = vector.multi_reduction <maximumf>, %85, %cst_25 [2] : vector<3x8x8xf32> to vector<3x8xf32>
    %87 = vector.shape_cast %86 : vector<3x8xf32> to vector<3x8x1xf32>
    %88 = vector.broadcast %87 : vector<3x8x1xf32> to vector<3x8x8xf32>
    %89 = arith.subf %85, %88 : vector<3x8x8xf32>
    %90 = math.exp %89 : vector<3x8x8xf32>
    %cst_26 = arith.constant dense<0.000000e+00> : vector<3x8xf32>
    %91 = vector.multi_reduction <add>, %90, %cst_26 [2] : vector<3x8x8xf32> to vector<3x8xf32>
    %92 = vector.shape_cast %91 : vector<3x8xf32> to vector<3x8x1xf32>
    %93 = arith.truncf %90 : vector<3x8x8xf32> to vector<3x8x8xbf16>
    "tpu.trace_start"() <{level = 10 : i32, message = "bqk,bkd->bqd"}> : () -> ()
    %cst_27 = arith.constant dense<0.000000e+00> : vector<3x8x4xf32>
    %94 = tpu.matmul %93, %82, %cst_27 {dimension_numbers = #tpu.dot_dimension_numbers<[2], [1], [1], [2], [0, 0, 0, 1, 1, 2], [0], [0]>} : vector<3x8x8xbf16>, vector<3x8x4xbf16>, vector<3x8x4xf32> -> vector<3x8x4xf32>
    "tpu.trace_stop"() : () -> ()
    %95 = tpu.reciprocal %92 {approx = true} : vector<3x8x1xf32> -> vector<3x8x1xf32>
    %96 = vector.broadcast %95 : vector<3x8x1xf32> to vector<3x8x4xf32>
    %97 = arith.mulf %94, %96 : vector<3x8x4xf32>
    %98 = vector.extract_strided_slice %5 {offsets = [0, 0, 20], sizes = [3, 8, 4], strides = [1, 1, 1]} : vector<3x8x32xbf16> to vector<3x8x4xbf16>
    %99 = vector.extract_strided_slice %6 {offsets = [0, 0, 20], sizes = [3, 8, 4], strides = [1, 1, 1]} : vector<3x8x32xbf16> to vector<3x8x4xbf16>
    %100 = vector.extract_strided_slice %7 {offsets = [0, 0, 20], sizes = [3, 8, 4], strides = [1, 1, 1]} : vector<3x8x32xbf16> to vector<3x8x4xbf16>
    "tpu.trace_start"() <{level = 10 : i32, message = "bqd,bkd->bqk"}> : () -> ()
    %cst_28 = arith.constant dense<0.000000e+00> : vector<3x8x8xf32>
    %101 = tpu.matmul %98, %99, %cst_28 {dimension_numbers = #tpu.dot_dimension_numbers<[2], [2], [1], [1], [0, 0, 0, 1, 1, 1], [0], [0]>} : vector<3x8x4xbf16>, vector<3x8x4xbf16>, vector<3x8x8xf32> -> vector<3x8x8xf32>
    "tpu.trace_stop"() : () -> ()
    %cst_29 = arith.constant 5.000000e-01 : f32
    %102 = vector.broadcast %cst_29 : f32 to vector<3x8x8xf32>
    %103 = arith.mulf %101, %102 : vector<3x8x8xf32>
    %cst_30 = arith.constant dense<0xFF800000> : vector<3x8xf32>
    %104 = vector.multi_reduction <maximumf>, %103, %cst_30 [2] : vector<3x8x8xf32> to vector<3x8xf32>
    %105 = vector.shape_cast %104 : vector<3x8xf32> to vector<3x8x1xf32>
    %106 = vector.broadcast %105 : vector<3x8x1xf32> to vector<3x8x8xf32>
    %107 = arith.subf %103, %106 : vector<3x8x8xf32>
    %108 = math.exp %107 : vector<3x8x8xf32>
    %cst_31 = arith.constant dense<0.000000e+00> : vector<3x8xf32>
    %109 = vector.multi_reduction <add>, %108, %cst_31 [2] : vector<3x8x8xf32> to vector<3x8xf32>
    %110 = vector.shape_cast %109 : vector<3x8xf32> to vector<3x8x1xf32>
    %111 = arith.truncf %108 : vector<3x8x8xf32> to vector<3x8x8xbf16>
    "tpu.trace_start"() <{level = 10 : i32, message = "bqk,bkd->bqd"}> : () -> ()
    %cst_32 = arith.constant dense<0.000000e+00> : vector<3x8x4xf32>
    %112 = tpu.matmul %111, %100, %cst_32 {dimension_numbers = #tpu.dot_dimension_numbers<[2], [1], [1], [2], [0, 0, 0, 1, 1, 2], [0], [0]>} : vector<3x8x8xbf16>, vector<3x8x4xbf16>, vector<3x8x4xf32> -> vector<3x8x4xf32>
    "tpu.trace_stop"() : () -> ()
    %113 = tpu.reciprocal %110 {approx = true} : vector<3x8x1xf32> -> vector<3x8x1xf32>
    %114 = vector.broadcast %113 : vector<3x8x1xf32> to vector<3x8x4xf32>
    %115 = arith.mulf %112, %114 : vector<3x8x4xf32>
    %116 = vector.extract_strided_slice %5 {offsets = [0, 0, 24], sizes = [3, 8, 4], strides = [1, 1, 1]} : vector<3x8x32xbf16> to vector<3x8x4xbf16>
    %117 = vector.extract_strided_slice %6 {offsets = [0, 0, 24], sizes = [3, 8, 4], strides = [1, 1, 1]} : vector<3x8x32xbf16> to vector<3x8x4xbf16>
    %118 = vector.extract_strided_slice %7 {offsets = [0, 0, 24], sizes = [3, 8, 4], strides = [1, 1, 1]} : vector<3x8x32xbf16> to vector<3x8x4xbf16>
    "tpu.trace_start"() <{level = 10 : i32, message = "bqd,bkd->bqk"}> : () -> ()
    %cst_33 = arith.constant dense<0.000000e+00> : vector<3x8x8xf32>
    %119 = tpu.matmul %116, %117, %cst_33 {dimension_numbers = #tpu.dot_dimension_numbers<[2], [2], [1], [1], [0, 0, 0, 1, 1, 1], [0], [0]>} : vector<3x8x4xbf16>, vector<3x8x4xbf16>, vector<3x8x8xf32> -> vector<3x8x8xf32>
    "tpu.trace_stop"() : () -> ()
    %cst_34 = arith.constant 5.000000e-01 : f32
    %120 = vector.broadcast %cst_34 : f32 to vector<3x8x8xf32>
    %121 = arith.mulf %119, %120 : vector<3x8x8xf32>
    %cst_35 = arith.constant dense<0xFF800000> : vector<3x8xf32>
    %122 = vector.multi_reduction <maximumf>, %121, %cst_35 [2] : vector<3x8x8xf32> to vector<3x8xf32>
    %123 = vector.shape_cast %122 : vector<3x8xf32> to vector<3x8x1xf32>
    %124 = vector.broadcast %123 : vector<3x8x1xf32> to vector<3x8x8xf32>
    %125 = arith.subf %121, %124 : vector<3x8x8xf32>
    %126 = math.exp %125 : vector<3x8x8xf32>
    %cst_36 = arith.constant dense<0.000000e+00> : vector<3x8xf32>
    %127 = vector.multi_reduction <add>, %126, %cst_36 [2] : vector<3x8x8xf32> to vector<3x8xf32>
    %128 = vector.shape_cast %127 : vector<3x8xf32> to vector<3x8x1xf32>
    %129 = arith.truncf %126 : vector<3x8x8xf32> to vector<3x8x8xbf16>
    "tpu.trace_start"() <{level = 10 : i32, message = "bqk,bkd->bqd"}> : () -> ()
    %cst_37 = arith.constant dense<0.000000e+00> : vector<3x8x4xf32>
    %130 = tpu.matmul %129, %118, %cst_37 {dimension_numbers = #tpu.dot_dimension_numbers<[2], [1], [1], [2], [0, 0, 0, 1, 1, 2], [0], [0]>} : vector<3x8x8xbf16>, vector<3x8x4xbf16>, vector<3x8x4xf32> -> vector<3x8x4xf32>
    "tpu.trace_stop"() : () -> ()
    %131 = tpu.reciprocal %128 {approx = true} : vector<3x8x1xf32> -> vector<3x8x1xf32>
    %132 = vector.broadcast %131 : vector<3x8x1xf32> to vector<3x8x4xf32>
    %133 = arith.mulf %130, %132 : vector<3x8x4xf32>
    %134 = vector.extract_strided_slice %5 {offsets = [0, 0, 28], sizes = [3, 8, 4], strides = [1, 1, 1]} : vector<3x8x32xbf16> to vector<3x8x4xbf16>
    %135 = vector.extract_strided_slice %6 {offsets = [0, 0, 28], sizes = [3, 8, 4], strides = [1, 1, 1]} : vector<3x8x32xbf16> to vector<3x8x4xbf16>
    %136 = vector.extract_strided_slice %7 {offsets = [0, 0, 28], sizes = [3, 8, 4], strides = [1, 1, 1]} : vector<3x8x32xbf16> to vector<3x8x4xbf16>
    "tpu.trace_start"() <{level = 10 : i32, message = "bqd,bkd->bqk"}> : () -> ()
    %cst_38 = arith.constant dense<0.000000e+00> : vector<3x8x8xf32>
    %137 = tpu.matmul %134, %135, %cst_38 {dimension_numbers = #tpu.dot_dimension_numbers<[2], [2], [1], [1], [0, 0, 0, 1, 1, 1], [0], [0]>} : vector<3x8x4xbf16>, vector<3x8x4xbf16>, vector<3x8x8xf32> -> vector<3x8x8xf32>
    "tpu.trace_stop"() : () -> ()
    %cst_39 = arith.constant 5.000000e-01 : f32
    %138 = vector.broadcast %cst_39 : f32 to vector<3x8x8xf32>
    %139 = arith.mulf %137, %138 : vector<3x8x8xf32>
    %cst_40 = arith.constant dense<0xFF800000> : vector<3x8xf32>
    %140 = vector.multi_reduction <maximumf>, %139, %cst_40 [2] : vector<3x8x8xf32> to vector<3x8xf32>
    %141 = vector.shape_cast %140 : vector<3x8xf32> to vector<3x8x1xf32>
    %142 = vector.broadcast %141 : vector<3x8x1xf32> to vector<3x8x8xf32>
    %143 = arith.subf %139, %142 : vector<3x8x8xf32>
    %144 = math.exp %143 : vector<3x8x8xf32>
    %cst_41 = arith.constant dense<0.000000e+00> : vector<3x8xf32>
    %145 = vector.multi_reduction <add>, %144, %cst_41 [2] : vector<3x8x8xf32> to vector<3x8xf32>
    %146 = vector.shape_cast %145 : vector<3x8xf32> to vector<3x8x1xf32>
    %147 = arith.truncf %144 : vector<3x8x8xf32> to vector<3x8x8xbf16>
    "tpu.trace_start"() <{level = 10 : i32, message = "bqk,bkd->bqd"}> : () -> ()
    %cst_42 = arith.constant dense<0.000000e+00> : vector<3x8x4xf32>
    %148 = tpu.matmul %147, %136, %cst_42 {dimension_numbers = #tpu.dot_dimension_numbers<[2], [1], [1], [2], [0, 0, 0, 1, 1, 2], [0], [0]>} : vector<3x8x8xbf16>, vector<3x8x4xbf16>, vector<3x8x4xf32> -> vector<3x8x4xf32>
    "tpu.trace_stop"() : () -> ()
    %149 = tpu.reciprocal %146 {approx = true} : vector<3x8x1xf32> -> vector<3x8x1xf32>
    %150 = vector.broadcast %149 : vector<3x8x1xf32> to vector<3x8x4xf32>
    %151 = arith.mulf %148, %150 : vector<3x8x4xf32>
    %152 = tpu.concatenate %25, %43, %61, %79, %97, %115, %133, %151 in 2 : vector<3x8x4xf32>, vector<3x8x4xf32>, vector<3x8x4xf32>, vector<3x8x4xf32>, vector<3x8x4xf32>, vector<3x8x4xf32>, vector<3x8x4xf32>, vector<3x8x4xf32> -> vector<3x8x32xf32>
    %153 = vector.shape_cast %152 : vector<3x8x32xf32> to vector<24x32xf32>
    %154 = arith.truncf %153 : vector<24x32xf32> to vector<24x32xbf16>
    %c0_43 = arith.constant 0 : index
    %c0_44 = arith.constant 0 : index
    %155 = vector.load %arg3[%c0_43, %c0_44] : memref<32x32xbf16, #tpu.memory_space<vmem>>, vector<32x32xbf16>
    %cst_45 = arith.constant dense<0.000000e+00> : vector<24x32xf32>
    %156 = tpu.matmul %154, %155, %cst_45 {dimension_numbers = #tpu.dot_dimension_numbers<[1], [0], [0], [1], [0, 0, 1, 1], [], []>} : vector<24x32xbf16>, vector<32x32xbf16>, vector<24x32xf32> -> vector<24x32xf32>
    %c0_46 = arith.constant 0 : index
    %c0_47 = arith.constant 0 : index
    %157 = vector.load %arg4[%c0_46, %c0_47] : memref<1x32xf32, #tpu.memory_space<vmem>>, vector<1x32xf32>
    %158 = vector.broadcast %157 : vector<1x32xf32> to vector<24x32xf32>
    %159 = arith.addf %156, %158 : vector<24x32xf32>
    %c0_48 = arith.constant 0 : index
    %c0_49 = arith.constant 0 : index
    %160 = vector.load %arg5[%c0_48, %c0_49] : memref<24x32xf32, #tpu.memory_space<vmem>>, vector<24x32xf32>
    tpu.vector_store %arg5[%c0_48, %c0_49], %159 {strides = array<i32>} : memref<24x32xf32, #tpu.memory_space<vmem>>, vector<24x32xf32>,
    return
  }
  func.func @transform_0(%arg0: i32) -> (i32, i32) {
    %c0_i32 = arith.constant 0 : i32
    %c0_i32_0 = arith.constant 0 : i32
    return %arg0, %c0_i32 : i32, i32
  }
  func.func @transform_1(%arg0: i32) -> (i32, i32) {
    %c0_i32 = arith.constant 0 : i32
    %c0_i32_0 = arith.constant 0 : i32
    %c0_i32_1 = arith.constant 0 : i32
    return %c0_i32, %c0_i32_0 : i32, i32
  }
  func.func @transform_2(%arg0: i32) -> (i32, i32) {
    %c0_i32 = arith.constant 0 : i32
    %c0_i32_0 = arith.constant 0 : i32
    %c0_i32_1 = arith.constant 0 : i32
    return %c0_i32, %c0_i32_0 : i32, i32
  }
  func.func @transform_3(%arg0: i32) -> (i32, i32) {
    %c0_i32 = arith.constant 0 : i32
    %c0_i32_0 = arith.constant 0 : i32
    %c0_i32_1 = arith.constant 0 : i32
    return %c0_i32, %c0_i32_0 : i32, i32
  }
  func.func @transform_4(%arg0: i32) -> (i32, i32) {
    %c0_i32 = arith.constant 0 : i32
    %c0_i32_0 = arith.constant 0 : i32
    return %arg0, %c0_i32 : i32, i32
  }
}

</mosaic_0001>

<bundles_post_ra>
// kernel: tpu_custom_call.1
= control target key start
LH: loop header
LB: loop body
LE: loop exit
PB: predicated region body
PF: predicated region fallthrough
CT: control target
= control target key end

     0   :  { %s3927_s15 = smov 0   ;;  %s4534_s0 = inlined_call_operand.vmem [shape: bf16[48,32], index: 0, kind: input, shape index: {}]   ;;  %s4535_s1 = inlined_call_operand.vmem [shape: bf16[32,96], index: 1, kind: input, shape index: {}]   ;;  %s4536_s2 = inlined_call_operand.vmem [shape: bf16[32,32], index: 2, kind: input, shape index: {}]   ;;  %s4537_s3 = inlined_call_operand.vmem [shape: f32[1,32], index: 3, kind: input, shape index: {}]   ;;  %s4538_s4 = inlined_call_operand.vmem [shape: f32[48,32], index: 4, kind: output, shape index: {}]  }
   0x1 LB: > { %s3203_s16 = sadd.s32 4294967295, %s3868_s15   ;;  %p3207_p0 = scmp.ge.s32.totalorder %s3868_s15, 1  ;;  %s3868_s15 = sphi %s3927_s15, %s14_s15  }
   0x2   : > { %p163_p1 = scmp.lt.s32.totalorder %s3868_s15, 3 }
   0x4   : > { %p164_p2 = pnand %p3207_p0, %p163_p1 }
   0x5   : > { %v3760_v0 = vld [vmem:[%s4535_s1] sm:$0xff] (!%p164_p2)   ;;  %s189_s19 = smul.u32 (!%p164_p2), 3, %s3203_s16  ;;  %v3761_v1 = vld [vmem:[%s4535_s1 + $0x8] sm:$0xff] (!%p164_p2)   ;;  %vm229_vm0 = vcmask (!%p164_p2), 261120   ;;  %v3870_v4 = vmov (!%p164_p2), 0.0   ;;  %vm3871_vm1 = vmmov (!%p164_p2), 0  }
   0x6   : > { %167 = sbr.rel (%p164_p2) target bundleno = 3995 (0xf9b), region = 36  ;;  %3381 = vmatprep.subr.bf16.mxu0 (!%p164_p2), %v3760_v0  ;;  %3389 = vmatprep.subr.bf16.mxu1 (!%p164_p2), %v3870_v4  ;;  %s3872_s26 = smov (!%p164_p2), 96   ;;  %vm296_vm2 = vcmask (!%p164_p2), 31744   ;;  %vm478_vm3 = vcmask (!%p164_p2), 1043456   ;;  %vm442_vm4 = vcmask (!%p164_p2), 64512   ;;  %vm3045_vm5 = vcmask (!%p164_p2), 97280  }
   0x7   : > { %p190_p3 = scmp.lt.s32.totalorder (!%p164_p2), %s189_s19, 5  ;;  %3382 = vmatpush3.bf16.msra.mxu0 (!%p164_p2), %v3760_v0  ;;  %3391 = vmatprep.mubr.msk.bf16.mxu1 (!%p164_p2), %vm3871_vm1, %v3870_v4  ;;  %s3873_s27 = smov (!%p164_p2), 64   ;;  %vm3049_vm6 = vcmask (!%p164_p2), 130048   ;;  %vm3053_vm7 = vcmask (!%p164_p2), 162816   ;;  %vm3057_vm8 = vcmask (!%p164_p2), 195584   ;;  %vm3061_vm9 = vcmask (!%p164_p2), 228352  }
   0x8   : > { %3383 = vmatprep.subr.bf16.mxu0 (!%p164_p2), %v3761_v1  ;;  %s3874_s28 = smov (!%p164_p2), 92   ;;  %s3875_s29 = smov (!%p164_p2), 124  }
   0x9   : > { %s3876_s30 = smov (!%p164_p2), 60   ;;  %s3877_s5 = smov (!%p164_p2), 88  }
   0xa   : > { %s3878_s6 = smov (!%p164_p2), 120   ;;  %s3879_s7 = smov (!%p164_p2), 56  }
   0xb   : > { %3384 = vmatpush3.bf16.msra.mxu0 (!%p164_p2), %v3761_v1  ;;  %s3880_s8 = smov (!%p164_p2), 84   ;;  %s3881_s9 = smov (!%p164_p2), 116  }
   0xc   : > { %3395 = vmatprep.subr.bf16.mxu0 (!%p164_p2), %v3870_v4  ;;  %s3882_s10 = smov (!%p164_p2), 52   ;;  %s3883_s11 = smov (!%p164_p2), 80  }
   0xd   : > { %s4540_s19 = smov (!%p190_p3, %s189_s19), 5  ;;  %s3884_s12 = smov 112  }
   0xe   : > { %s3208_s22 = sshll.u32 %s4540_s19, 2  ;;  %s3885_s13 = smov 48  }
   0xf   : > { %s193_s25 = scalar_lea.vmem %s4534_s0, %s3208_s22  ;;  %s3886_s14 = smov 76  }
  0x10   : > { %v3762_v2 = vld [vmem:[%s193_s25] sm:$0xff]   ;;  %v3763_v3 = vld [vmem:[%s193_s25 + $0x8] ss:$0 sps:$4 sm:$0xff]   ;;  %s3887_s16 = smov 108   ;;  %s3888_s17 = smov 44  }
  0x11   : > { %3385 = vmatprep.mubr.msk.bf16.mxu0 %vm229_vm0, %v3762_v2  ;;  %s3889_s18 = smov 72   ;;  %s3890_s20 = smov 104  }
  0x12   : > { %3386 = vmatmul.mubr.msk.bf16.vlgmr.msra.gmra.mrb[0].mxu0 %vm229_vm0, %v3763_v3  ;;  %s3891_s21 = smov 40   ;;  %s3892_s22 = smov 68  }
  0x13   : > { %3397 = vmatprep.mubr.msk.bf16.mxu0 %vm3871_vm1, %v3870_v4  ;;  %s3893_s23 = smov 100   ;;  %s3894_s24 = smov 36  }
  0x14   : > { %s3895_s25 = smov 4  }
  0xe5   : > { %v3387_v5 = vpop.f32.mrb[0].mxu0 }
  0xe6   : > { %v3955_v6 = vpack.c.bf16 %v3387_v5, %v3387_v5  ;;  %v270_v7 = vpop.f32.mrb[1].mxu0 }
  0xe7   : > { %v3957_v8 = vpack.c.bf16 %v270_v7, %v270_v7  ;;  %v3388_v9 = vpop.f32.mrb[2].mxu0 }
  0xe8   : > { %391 = vrot.lane.b32.xlu1 %v3955_v6, %s3872_s26  ;;  %v273_v10 = vpop.f32.mrb[3].mxu0 }
  0xe9   : > { %294 = vrot.lane.b32.xlu0 %v3957_v8, %s3872_s26  ;;  %v3961_v11 = vpack.c.bf16 %v273_v10, %v273_v10 }
  0xec   : > { %570 = vrot.lane.b32.xlu1 %v3955_v6, %s3873_s27 }
  0xed   : > { %343 = vrot.lane.b32.xlu0 %v3961_v11, %s3872_s26  ;;  %s3896_s26 = smov 8  }
  0xf0   : > { %522 = vrot.lane.b32.xlu1 %v3961_v11, %s3873_s27 }
  0xf1   : > { %473 = vrot.lane.b32.xlu0 %v3957_v8, %s3873_s27  ;;  %s3897_s27 = smov 12  }
 0x15a   : > { %v392_v14 = vpop.permute.xlu1 %391 }
 0x15b   : > { %v295_v12 = vpop.permute.xlu0 %294  ;;  %v397_v18 = vsel %vm296_vm2, %v392_v14, 0 }
 0x15c   : > { %v301_v13 = vsel %vm296_vm2, %v295_v12, 0 }
 0x15d   : > { %3390 = vmatpush3.bf16.xpose.msra.mxu1 %v301_v13 }
 0x15e   : > { %3401 = vmatprep.subr.bf16.mxu1 %v3870_v4  ;;  %v3971_v17 = vpop.permute.xlu1 %570 }
 0x15f   : > { %v344_v15 = vpop.permute.xlu0 %343  ;;  %v576_v54 = vsel %vm478_vm3, %v3971_v17, 0 }
 0x160   : > { %v349_v16 = vsel %vm296_vm2, %v344_v15, 0 }
 0x161   : > { %3396 = vmatpush3.bf16.xpose.msra.mxu0 %v349_v16 }
 0x162   : > { %3407 = vmatprep.subr.bf16.mxu0 %v3870_v4  ;;  %v523_v21 = vpop.permute.xlu1 %522 }
 0x163   : > { %v474_v19 = vpop.permute.xlu0 %473  ;;  %v528_v22 = vsel %vm478_vm3, %v523_v21, 0 }
 0x164   : > { %3392 = vmatmul.mubr.msk.bf16.vlgmr.msra.gmra.mrb[0].mxu1 %vm296_vm2, %v3957_v8  ;;  %v480_v20 = vsel %vm478_vm3, %v474_v19, 0 }
 0x165   : > { %3402 = vmatpush3.bf16.xpose.msra.mxu1 %v397_v18  ;;  %3403 = vmatprep.mubr.msk.bf16.mxu1 %vm3871_vm1, %v3870_v4 }
 0x166   : > { %3413 = vmatprep.subr.bf16.mxu1 %v3870_v4 }
 0x168   : > { %3398 = vmatmul.mubr.msk.bf16.vlgmr.msra.gmra.mrb[4].mxu0 %vm296_vm2, %v3961_v11 }
 0x169   : > { %3408 = vmatpush3.bf16.msra.mxu0 %v480_v20  ;;  %3409 = vmatprep.mubr.msk.bf16.mxu0 %vm3871_vm1, %v3870_v4 }
 0x16a   : > { %3419 = vmatprep.subr.bf16.mxu0 %v3870_v4 }
 0x16c   : > { %3404 = vmatmul.mubr.msk.bf16.vlgmr.msra.gmra.mrb[4].mxu1 %vm296_vm2, %v3955_v6 }
 0x16d   : > { %3414 = vmatpush3.bf16.msra.mxu1 %v528_v22  ;;  %3415 = vmatprep.mubr.msk.bf16.mxu1 %vm3871_vm1, %v3870_v4 }
 0x16e   : > { %3425 = vmatprep.subr.bf16.mxu1 %v3870_v4 }
 0x237   : > { %v337_v23 = vpop.f32.mrb[0].mxu1 }
 0x238   : > { %v439_v24 = vmul.f32 0.5, %v337_v23  ;;  %v3393_v25 = vpop.f32.mrb[1].mxu1 }
 0x239   : > { %v340_v26 = vpop.f32.mrb[2].mxu1 }
 0x23a   : > { %v3394_v27 = vpop.f32.mrb[3].mxu1  ;;  %v443_v28 = vsel %vm442_vm4, %v439_v24, -inf }
 0x23b   : > { %444 = vmax.xlane.f32.xlu1 %v443_v28  ;;  %v385_v29 = vpop.f32.mrb[4].mxu0 }
 0x23c   : > { %v440_v30 = vmul.f32 0.5, %v385_v29  ;;  %v3399_v31 = vpop.f32.mrb[5].mxu0 }
 0x23d   : > { %v388_v32 = vpop.f32.mrb[6].mxu0 }
 0x23e   : > { %v3400_v33 = vpop.f32.mrb[7].mxu0  ;;  %v446_v34 = vsel %vm442_vm4, %v440_v30, -inf }
 0x23f   : > { %v433_v35 = vpop.f32.mrb[4].mxu1  ;;  %447 = vmax.xlane.f32.xlu0 %v446_v34 }
 0x240   : > { %v441_v36 = vmul.f32 0.5, %v433_v35  ;;  %v3405_v37 = vpop.f32.mrb[5].mxu1 }
 0x241   : > { %v436_v38 = vpop.f32.mrb[6].mxu1 }
 0x242   : > { %v3406_v39 = vpop.f32.mrb[7].mxu1  ;;  %v449_v40 = vsel %vm442_vm4, %v441_v36, -inf }
 0x243   : > { %450 = vmax.xlane.f32.xlu0 %v449_v40 }
 0x24c   : > { %626 = vrot.lane.b32.xlu1 %v3957_v8, %s3874_s28 }
 0x250   : > { %624 = vrot.lane.b32.xlu1 %v3957_v8, %s3875_s29 }
 0x254   : > { %674 = vrot.lane.b32.xlu1 %v3961_v11, %s3875_s29 }
 0x258   : > { %807 = vrot.lane.b32.xlu1 %v3957_v8, %s3876_s30 }
 0x259   : > { %676 = vrot.lane.b32.xlu0 %v3961_v11, %s3874_s28 }
 0x25d   : > { %726 = vrot.lane.b32.xlu0 %v3955_v6, %s3874_s28  ;;  %s3898_s28 = smov 16  }
 0x261   : > { %724 = vrot.lane.b32.xlu0 %v3955_v6, %s3875_s29  ;;  %s3899_s29 = smov 20  }
 0x265   : > { %855 = vrot.lane.b32.xlu0 %v3961_v11, %s3876_s30 }
 0x2c8   : > { %v445_v41 = vpop.xlane.xlu1 %444 }
 0x2c9   : > { %v452_v42 = vsub.f32 %v439_v24, %v445_v41 }
 0x2cb   : > { %v455_v43 = vmul.f32 1.442695, %v452_v42 }
 0x2cc   : > { %v448_v44 = vpop.xlane.xlu0 %447  ;;  %v627_v50 = vpop.permute.xlu1 %626 }
 0x2cd   : > { %3766 = vpow2.f32 %v455_v43  ;;  %v453_v45 = vsub.f32 %v440_v30, %v448_v44  ;;  %v632_v58 = vsel %vm296_vm2, %v627_v50, 0 }
 0x2cf   : > { %v457_v46 = vmul.f32 1.442695, %v453_v45 }
 0x2d0   : > { %v451_v47 = vpop.xlane.xlu0 %450  ;;  %v625_v56 = vpop.permute.xlu1 %624 }
 0x2d1   : > { %3768 = vpow2.f32 %v457_v46  ;;  %v454_v48 = vsub.f32 %v441_v36, %v451_v47 }
 0x2d3   : > { %v459_v49 = vmul.f32 1.442695, %v454_v48 }
 0x2d4   : > { %v677_v53 = vpop.permute.xlu0 %676  ;;  %v675_v62 = vpop.permute.xlu1 %674 }
 0x2d5   : > { %3770 = vpow2.f32 %v459_v49  ;;  %v682_v63 = vsel %vm296_vm2, %v677_v53, 0 }
 0x2d7   : > { %v4004_v51 = vpop.eup %3766 }
 0x2d8   : > { %v470_v52 = vpack.c.bf16 %v4004_v51, %v4004_v51  ;;  %v727_v60 = vpop.permute.xlu0 %726  ;;  %v808_v2 = vpop.permute.xlu1 %807 }
 0x2d9   : > { %v732_v1 = vsel %vm296_vm2, %v727_v60, 0  ;;  %v813_v3 = vsel %vm478_vm3, %v808_v2, 0 }
 0x2da   : > { %3410 = vmatmul.mubr.msk.bf16.vlgmr.msra.gmra.mrb[8].mxu0 %vm442_vm4, %v470_v52 }
 0x2db   : > { %v4011_v55 = vpop.eup %3768  ;;  %3420 = vmatpush3.bf16.msra.mxu0 %v576_v54  ;;  %3421 = vmatprep.mubr.msk.bf16.mxu0 %vm3871_vm1, %v3870_v4 }
 0x2dc   : > { %v471_v57 = vpack.c.bf16 %v4011_v55, %v4011_v55  ;;  %3431 = vmatprep.subr.bf16.mxu0 %v3870_v4  ;;  %v725_v0 = vpop.permute.xlu0 %724 }
 0x2de   : > { %3416 = vmatmul.mubr.msk.bf16.vlgmr.msra.gmra.mrb[8].mxu1 %vm442_vm4, %v471_v57 }
 0x2df   : > { %v4020_v59 = vpop.eup %3770  ;;  %3426 = vmatpush3.bf16.xpose.msra.mxu1 %v632_v58  ;;  %3427 = vmatprep.mubr.msk.bf16.mxu1 %vm3871_vm1, %v3870_v4 }
 0x2e0   : > { %v472_v61 = vpack.c.bf16 %v4020_v59, %v4020_v59  ;;  %3437 = vmatprep.subr.bf16.mxu1 %v3870_v4  ;;  %v856_v5 = vpop.permute.xlu0 %855 }
 0x2e1   : > { %v861_v7 = vsel %vm478_vm3, %v856_v5, 0 }
 0x2e2   : > { %3422 = vmatmul.mubr.msk.bf16.vlgmr.msra.gmra.mrb[12].mxu0 %vm442_vm4, %v472_v61 }
 0x2e3   : > { %3433 = vmatprep.mubr.msk.bf16.mxu0 %vm3871_vm1, %v3870_v4 }
 0x2e4   : > { %3432 = vmatpush3.bf16.xpose.msra.mxu0 %v682_v63 }
 0x2e5   : > { %3443 = vmatprep.subr.bf16.mxu0 %v3870_v4 }
 0x2e6   : > { %3428 = vmatmul.mubr.msk.bf16.vlgmr.msra.gmra.mrb[12].mxu1 %vm296_vm2, %v625_v56 }
 0x2e7   : > { %3438 = vmatpush3.bf16.xpose.msra.mxu1 %v732_v1  ;;  %3439 = vmatprep.mubr.msk.bf16.mxu1 %vm3871_vm1, %v3870_v4 }
 0x2e8   : > { %3449 = vmatprep.subr.bf16.mxu1 %v3870_v4 }
 0x2eb   : > { %3434 = vmatmul.mubr.msk.bf16.vlgmr.msra.gmra.mrb[16].mxu0 %vm296_vm2, %v675_v62 }
 0x2ec   : > { %3444 = vmatpush3.bf16.msra.mxu0 %v813_v3  ;;  %3445 = vmatprep.mubr.msk.bf16.mxu0 %vm3871_vm1, %v3870_v4 }
 0x2ed   : > { %3455 = vmatprep.subr.bf16.mxu0 %v3870_v4 }
 0x2ee   : > { %3440 = vmatmul.mubr.msk.bf16.vlgmr.msra.gmra.mrb[16].mxu1 %vm296_vm2, %v725_v0 }
 0x2ef   : > { %3450 = vmatpush3.bf16.msra.mxu1 %v861_v7  ;;  %3451 = vmatprep.mubr.msk.bf16.mxu1 %vm3871_vm1, %v3870_v4 }
 0x2f0   : > { %3461 = vmatprep.subr.bf16.mxu1 %v3870_v4 }
 0x3ad   : > { %v4047_v9 = vpop.f32.mrb[8].mxu0 }
 0x3ae   : > { %v3411_v10 = vpop.f32.mrb[9].mxu0 }
 0x3af   : > { %v519_v12 = vpop.f32.mrb[10].mxu0 }
 0x3b0   : > { %v3412_v13 = vpop.f32.mrb[11].mxu0 }
 0x3b1   : > { %v4049_v14 = vpop.f32.mrb[8].mxu1 }
 0x3b2   : > { %v3417_v15 = vpop.f32.mrb[9].mxu1 }
 0x3b3   : > { %v567_v16 = vpop.f32.mrb[10].mxu1 }
 0x3b4   : > { %v3418_v17 = vpop.f32.mrb[11].mxu1 }
 0x3b5   : > { %v4051_v18 = vpop.f32.mrb[12].mxu0 }
 0x3b6   : > { %v3423_v19 = vpop.f32.mrb[13].mxu0 }
 0x3b7   : > { %v615_v20 = vpop.f32.mrb[14].mxu0 }
 0x3b8   : > { %v3424_v21 = vpop.f32.mrb[15].mxu0 }
 0x3b9   : > { %v668_v22 = vpop.f32.mrb[12].mxu1 }
 0x3ba   : > { %v774_v23 = vmul.f32 0.5, %v668_v22  ;;  %v3429_v24 = vpop.f32.mrb[13].mxu1 }
 0x3bb   : > { %v671_v25 = vpop.f32.mrb[14].mxu1 }
 0x3bc   : > { %v3430_v26 = vpop.f32.mrb[15].mxu1  ;;  %v777_v27 = vsel %vm442_vm4, %v774_v23, -inf }
 0x3bd   : > { %778 = vmax.xlane.f32.xlu1 %v777_v27 }
 0x3be   : > { %v718_v28 = vpop.f32.mrb[16].mxu0 }
 0x3bf   : > { %v775_v29 = vmul.f32 0.5, %v718_v28  ;;  %v3435_v30 = vpop.f32.mrb[17].mxu0 }
 0x3c0   : > { %v721_v31 = vpop.f32.mrb[18].mxu0 }
 0x3c1   : > { %v3436_v32 = vpop.f32.mrb[19].mxu0  ;;  %v780_v33 = vsel %vm442_vm4, %v775_v29, -inf  ;;  %v768_v34 = vpop.f32.mrb[16].mxu1 }
 0x3c2   : > { %781 = vmax.xlane.f32.xlu0 %v780_v33  ;;  %v776_v35 = vmul.f32 0.5, %v768_v34  ;;  %v3441_v36 = vpop.f32.mrb[17].mxu1 }
 0x3c3   : > { %v771_v37 = vpop.f32.mrb[18].mxu1 }
 0x3c4   : > { %v3442_v38 = vpop.f32.mrb[19].mxu1  ;;  %v783_v39 = vsel %vm442_vm4, %v776_v35, -inf }
 0x3c6   : > { %784 = vmax.xlane.f32.xlu0 %v783_v39 }
 0x3ce   : > { %903 = vrot.lane.b32.xlu1 %v3955_v6, %s3876_s30  ;;  %s3900_s30 = smov 24  }
 0x3d2   : > { %959 = vrot.lane.b32.xlu1 %v3957_v8, %s3877_s5 }
 0x3d6   : > { %957 = vrot.lane.b32.xlu1 %v3957_v8, %s3878_s6 }
 0x3da   : > { %1007 = vrot.lane.b32.xlu1 %v3961_v11, %s3878_s6 }
 0x3dc   : > { %1009 = vrot.lane.b32.xlu0 %v3961_v11, %s3877_s5 }
 0x3de   : > { %1188 = vrot.lane.b32.xlu1 %v3961_v11, %s3879_s7 }
 0x3e0   : > { %1059 = vrot.lane.b32.xlu0 %v3955_v6, %s3877_s5 }
 0x3e2   : > { %1236 = vrot.lane.b32.xlu1 %v3955_v6, %s3879_s7 }
 0x3e4   : > { %1057 = vrot.lane.b32.xlu0 %v3955_v6, %s3878_s6 }
 0x3e8   : > { %1140 = vrot.lane.b32.xlu0 %v3957_v8, %s3879_s7 }
 0x44a   : > { %v779_v40 = vpop.xlane.xlu1 %778 }
 0x44b   : > { %v786_v41 = vsub.f32 %v774_v23, %v779_v40 }
 0x44d   : > { %v789_v42 = vmul.f32 1.442695, %v786_v41 }
 0x44e   : > { %v904_v48 = vpop.permute.xlu1 %903 }
 0x44f   : > { %3772 = vpow2.f32 %v789_v42  ;;  %v782_v43 = vpop.xlane.xlu0 %781  ;;  %v909_v54 = vsel %vm478_vm3, %v904_v48, 0 }
 0x450   : > { %v787_v44 = vsub.f32 %v775_v29, %v782_v43 }
 0x452   : > { %v791_v45 = vmul.f32 1.442695, %v787_v44  ;;  %v960_v56 = vpop.permute.xlu1 %959 }
 0x453   : > { %v785_v46 = vpop.xlane.xlu0 %784  ;;  %v965_v61 = vsel %vm296_vm2, %v960_v56, 0 }
 0x454   : > { %3774 = vpow2.f32 %v791_v45  ;;  %v788_v47 = vsub.f32 %v776_v35, %v785_v46 }
 0x456   : > { %v793_v49 = vmul.f32 1.442695, %v788_v47  ;;  %v958_v63 = vpop.permute.xlu1 %957 }
 0x457   : > { %v1010_v50 = vpop.permute.xlu0 %1009 }
 0x458   : > { %3776 = vpow2.f32 %v793_v49  ;;  %v1015_v2 = vsel %vm296_vm2, %v1010_v50, 0 }
 0x459   : > { %v4067_v52 = vpop.eup %3772 }
 0x45a   : > { %v804_v53 = vpack.c.bf16 %v4067_v52, %v4067_v52  ;;  %v1008_v3 = vpop.permute.xlu1 %1007 }
 0x45b   : > { %v1060_v58 = vpop.permute.xlu0 %1059 }
 0x45c   : > { %3446 = vmatmul.mubr.msk.bf16.vlgmr.msra.gmra.mrb[20].mxu0 %vm442_vm4, %v804_v53  ;;  %v1065_v5 = vsel %vm296_vm2, %v1060_v58, 0 }
 0x45d   : > { %3456 = vmatpush3.bf16.msra.mxu0 %v909_v54  ;;  %3457 = vmatprep.mubr.msk.bf16.mxu0 %vm3871_vm1, %v3870_v4 }
 0x45e   : > { %v4075_v57 = vpop.eup %3774  ;;  %3467 = vmatprep.subr.bf16.mxu0 %v3870_v4  ;;  %v1189_v12 = vpop.permute.xlu1 %1188 }
 0x45f   : > { %v805_v60 = vpack.c.bf16 %v4075_v57, %v4075_v57  ;;  %v1058_v1 = vpop.permute.xlu0 %1057  ;;  %v1194_v13 = vsel %vm478_vm3, %v1189_v12, 0 }
 0x461   : > { %3452 = vmatmul.mubr.msk.bf16.vlgmr.msra.gmra.mrb[20].mxu1 %vm442_vm4, %v805_v60 }
 0x462   : > { %v4082_v62 = vpop.eup %3776  ;;  %3462 = vmatpush3.bf16.xpose.msra.mxu1 %v965_v61  ;;  %3463 = vmatprep.mubr.msk.bf16.mxu1 %vm3871_vm1, %v3870_v4  ;;  %v1237_v46 = vpop.permute.xlu1 %1236 }
 0x463   : > { %v806_v0 = vpack.c.bf16 %v4082_v62, %v4082_v62  ;;  %3473 = vmatprep.subr.bf16.mxu1 %v3870_v4  ;;  %v1141_v7 = vpop.permute.xlu0 %1140 }
 0x464   : > { %v1146_v10 = vsel %vm478_vm3, %v1141_v7, 0 }
 0x465   : > { %3458 = vmatmul.mubr.msk.bf16.vlgmr.msra.gmra.mrb[24].mxu0 %vm442_vm4, %v806_v0 }
 0x466   : > { %3468 = vmatpush3.bf16.xpose.msra.mxu0 %v1015_v2  ;;  %3469 = vmatprep.mubr.msk.bf16.mxu0 %vm3871_vm1, %v3870_v4  ;;  %v1242_v2 = vsel %vm478_vm3, %v1237_v46, 0 }
 0x467   : > { %3479 = vmatprep.subr.bf16.mxu0 %v3870_v4 }
 0x469   : > { %3464 = vmatmul.mubr.msk.bf16.vlgmr.msra.gmra.mrb[24].mxu1 %vm296_vm2, %v958_v63 }
 0x46a   : > { %3474 = vmatpush3.bf16.xpose.msra.mxu1 %v1065_v5  ;;  %3475 = vmatprep.mubr.msk.bf16.mxu1 %vm3871_vm1, %v3870_v4 }
 0x46b   : > { %3485 = vmatprep.subr.bf16.mxu1 %v3870_v4 }
 0x46d   : > { %3470 = vmatmul.mubr.msk.bf16.vlgmr.msra.gmra.mrb[28].mxu0 %vm296_vm2, %v1008_v3 }
 0x46e   : > { %3480 = vmatpush3.bf16.msra.mxu0 %v1146_v10  ;;  %3481 = vmatprep.mubr.msk.bf16.mxu0 %vm3871_vm1, %v3870_v4 }
 0x46f   : > { %3491 = vmatprep.subr.bf16.mxu0 %v3870_v4 }
 0x471   : > { %3476 = vmatmul.mubr.msk.bf16.vlgmr.msra.gmra.mrb[28].mxu1 %vm296_vm2, %v1058_v1 }
 0x472   : > { %3486 = vmatpush3.bf16.msra.mxu1 %v1194_v13  ;;  %3487 = vmatprep.mubr.msk.bf16.mxu1 %vm3871_vm1, %v3870_v4 }
 0x473   : > { %3497 = vmatprep.subr.bf16.mxu1 %v3870_v4 }
 0x52f   : > { %v4109_v15 = vpop.f32.mrb[20].mxu0 }
 0x530   : > { %v3447_v16 = vpop.f32.mrb[21].mxu0 }
 0x531   : > { %v852_v17 = vpop.f32.mrb[22].mxu0 }
 0x532   : > { %v3448_v19 = vpop.f32.mrb[23].mxu0 }
 0x534   : > { %v4111_v20 = vpop.f32.mrb[20].mxu1 }
 0x535   : > { %v3453_v21 = vpop.f32.mrb[21].mxu1 }
 0x536   : > { %v900_v22 = vpop.f32.mrb[22].mxu1 }
 0x537   : > { %v3454_v23 = vpop.f32.mrb[23].mxu1 }
 0x538   : > { %v4113_v24 = vpop.f32.mrb[24].mxu0 }
 0x539   : > { %v3459_v25 = vpop.f32.mrb[25].mxu0 }
 0x53a   : > { %v948_v26 = vpop.f32.mrb[26].mxu0 }
 0x53b   : > { %v3460_v27 = vpop.f32.mrb[27].mxu0 }
 0x53c   : > { %v1001_v28 = vpop.f32.mrb[24].mxu1 }
 0x53d   : > { %v1107_v29 = vmul.f32 0.5, %v1001_v28  ;;  %v3465_v30 = vpop.f32.mrb[25].mxu1 }
 0x53e   : > { %v1004_v31 = vpop.f32.mrb[26].mxu1 }
 0x53f   : > { %v3466_v32 = vpop.f32.mrb[27].mxu1  ;;  %v1110_v33 = vsel %vm442_vm4, %v1107_v29, -inf }
 0x540   : > { %1111 = vmax.xlane.f32.xlu1 %v1110_v33  ;;  %v1051_v34 = vpop.f32.mrb[28].mxu0 }
 0x541   : > { %v1108_v35 = vmul.f32 0.5, %v1051_v34  ;;  %v3471_v36 = vpop.f32.mrb[29].mxu0 }
 0x542   : > { %v1054_v37 = vpop.f32.mrb[30].mxu0 }
 0x543   : > { %v3472_v38 = vpop.f32.mrb[31].mxu0  ;;  %v1113_v39 = vsel %vm442_vm4, %v1108_v35, -inf }
 0x544   : > { %1114 = vmax.xlane.f32.xlu0 %v1113_v39  ;;  %v1101_v40 = vpop.f32.mrb[28].mxu1 }
 0x545   : > { %v1109_v41 = vmul.f32 0.5, %v1101_v40  ;;  %v3477_v42 = vpop.f32.mrb[29].mxu1 }
 0x546   : > { %v1104_v43 = vpop.f32.mrb[30].mxu1 }
 0x547   : > { %v3478_v44 = vpop.f32.mrb[31].mxu1  ;;  %v1116_v45 = vsel %vm442_vm4, %v1109_v41, -inf }
 0x548   : > { %1117 = vmax.xlane.f32.xlu0 %v1116_v45 }
 0x551   : > { %1292 = vrot.lane.b32.xlu1 %v3957_v8, %s3880_s8 }
 0x555   : > { %1290 = vrot.lane.b32.xlu1 %v3957_v8, %s3881_s9 }
 0x559   : > { %1340 = vrot.lane.b32.xlu1 %v3961_v11, %s3881_s9 }
 0x55d   : > { %1473 = vrot.lane.b32.xlu1 %v3957_v8, %s3882_s10 }
 0x55e   : > { %1342 = vrot.lane.b32.xlu0 %v3961_v11, %s3880_s8 }
 0x562   : > { %1392 = vrot.lane.b32.xlu0 %v3955_v6, %s3880_s8 }
 0x566   : > { %1390 = vrot.lane.b32.xlu0 %v3955_v6, %s3881_s9  ;;  %s3901_s9 = smov 28  }
 0x56a   : > { %1521 = vrot.lane.b32.xlu0 %v3961_v11, %s3882_s10 }
 0x5cd   : > { %v1112_v47 = vpop.xlane.xlu1 %1111 }
 0x5ce   : > { %v1119_v48 = vsub.f32 %v1107_v29, %v1112_v47 }
 0x5d0   : > { %v1122_v49 = vmul.f32 1.442695, %v1119_v48 }
 0x5d1   : > { %v1115_v50 = vpop.xlane.xlu0 %1114  ;;  %v1293_v61 = vpop.permute.xlu1 %1292 }
 0x5d2   : > { %3778 = vpow2.f32 %v1122_v49  ;;  %v1120_v53 = vsub.f32 %v1108_v35, %v1115_v50  ;;  %v1298_v10 = vsel %vm296_vm2, %v1293_v61, 0 }
 0x5d4   : > { %v1124_v54 = vmul.f32 1.442695, %v1120_v53 }
 0x5d5   : > { %v1118_v56 = vpop.xlane.xlu0 %1117  ;;  %v1291_v5 = vpop.permute.xlu1 %1290 }
 0x5d6   : > { %3780 = vpow2.f32 %v1124_v54  ;;  %v1121_v58 = vsub.f32 %v1109_v41, %v1118_v56 }
 0x5d8   : > { %v1126_v60 = vmul.f32 1.442695, %v1121_v58 }
 0x5d9   : > { %v1343_v1 = vpop.permute.xlu0 %1342  ;;  %v1341_v17 = vpop.permute.xlu1 %1340 }
 0x5da   : > { %3782 = vpow2.f32 %v1126_v60  ;;  %v1348_v19 = vsel %vm296_vm2, %v1343_v1, 0 }
 0x5dc   : > { %v4128_v63 = vpop.eup %3778 }
 0x5dd   : > { %v1137_v0 = vpack.c.bf16 %v4128_v63, %v4128_v63  ;;  %v1393_v13 = vpop.permute.xlu0 %1392  ;;  %v1474_v23 = vpop.permute.xlu1 %1473 }
 0x5de   : > { %v1398_v22 = vsel %vm296_vm2, %v1393_v13, 0  ;;  %v1479_v25 = vsel %vm478_vm3, %v1474_v23, 0 }
 0x5df   : > { %3482 = vmatmul.mubr.msk.bf16.vlgmr.msra.gmra.mrb[32].mxu0 %vm442_vm4, %v1137_v0 }
 0x5e0   : > { %v4134_v3 = vpop.eup %3780  ;;  %3492 = vmatpush3.bf16.msra.mxu0 %v1242_v2  ;;  %3493 = vmatprep.mubr.msk.bf16.mxu0 %vm3871_vm1, %v3870_v4 }
 0x5e1   : > { %v1138_v7 = vpack.c.bf16 %v4134_v3, %v4134_v3  ;;  %3503 = vmatprep.subr.bf16.mxu0 %v3870_v4  ;;  %v1391_v21 = vpop.permute.xlu0 %1390 }
 0x5e3   : > { %3488 = vmatmul.mubr.msk.bf16.vlgmr.msra.gmra.mrb[32].mxu1 %vm442_vm4, %v1138_v7 }
 0x5e4   : > { %v4143_v12 = vpop.eup %3782  ;;  %3498 = vmatpush3.bf16.xpose.msra.mxu1 %v1298_v10  ;;  %3499 = vmatprep.mubr.msk.bf16.mxu1 %vm3871_vm1, %v3870_v4 }
 0x5e5   : > { %v1139_v16 = vpack.c.bf16 %v4143_v12, %v4143_v12  ;;  %3509 = vmatprep.subr.bf16.mxu1 %v3870_v4  ;;  %v1522_v26 = vpop.permute.xlu0 %1521 }
 0x5e6   : > { %v1527_v27 = vsel %vm478_vm3, %v1522_v26, 0 }
 0x5e7   : > { %3494 = vmatmul.mubr.msk.bf16.vlgmr.msra.gmra.mrb[36].mxu0 %vm442_vm4, %v1139_v16 }
 0x5e8   : > { %3505 = vmatprep.mubr.msk.bf16.mxu0 %vm3871_vm1, %v3870_v4 }
 0x5e9   : > { %3504 = vmatpush3.bf16.xpose.msra.mxu0 %v1348_v19 }
 0x5ea   : > { %3515 = vmatprep.subr.bf16.mxu0 %v3870_v4 }
 0x5eb   : > { %3500 = vmatmul.mubr.msk.bf16.vlgmr.msra.gmra.mrb[36].mxu1 %vm296_vm2, %v1291_v5 }
 0x5ec   : > { %3510 = vmatpush3.bf16.xpose.msra.mxu1 %v1398_v22  ;;  %3511 = vmatprep.mubr.msk.bf16.mxu1 %vm3871_vm1, %v3870_v4 }
 0x5ed   : > { %3521 = vmatprep.subr.bf16.mxu1 %v3870_v4 }
 0x5f0   : > { %3506 = vmatmul.mubr.msk.bf16.vlgmr.msra.gmra.mrb[40].mxu0 %vm296_vm2, %v1341_v17 }
 0x5f1   : > { %3516 = vmatpush3.bf16.msra.mxu0 %v1479_v25  ;;  %3517 = vmatprep.mubr.msk.bf16.mxu0 %vm3871_vm1, %v3870_v4 }
 0x5f2   : > { %3527 = vmatprep.subr.bf16.mxu0 %v3870_v4 }
 0x5f3   : > { %3512 = vmatmul.mubr.msk.bf16.vlgmr.msra.gmra.mrb[40].mxu1 %vm296_vm2, %v1391_v21 }
 0x5f4   : > { %3522 = vmatpush3.bf16.msra.mxu1 %v1527_v27  ;;  %3523 = vmatprep.mubr.msk.bf16.mxu1 %vm3871_vm1, %v3870_v4 }
 0x5f5   : > { %3533 = vmatprep.subr.bf16.mxu1 %v3870_v4 }
 0x6b2   : > { %v4170_v28 = vpop.f32.mrb[32].mxu0 }
 0x6b3   : > { %v3483_v29 = vpop.f32.mrb[33].mxu0 }
 0x6b4   : > { %v1185_v30 = vpop.f32.mrb[34].mxu0 }
 0x6b5   : > { %v3484_v31 = vpop.f32.mrb[35].mxu0 }
 0x6b6   : > { %v4172_v32 = vpop.f32.mrb[32].mxu1 }
 0x6b7   : > { %v3489_v33 = vpop.f32.mrb[33].mxu1 }
 0x6b8   : > { %v1233_v34 = vpop.f32.mrb[34].mxu1 }
 0x6b9   : > { %v3490_v35 = vpop.f32.mrb[35].mxu1 }
 0x6ba   : > { %v4174_v36 = vpop.f32.mrb[36].mxu0 }
 0x6bb   : > { %v3495_v37 = vpop.f32.mrb[37].mxu0 }
 0x6bc   : > { %v1281_v38 = vpop.f32.mrb[38].mxu0 }
 0x6bd   : > { %v3496_v39 = vpop.f32.mrb[39].mxu0 }
 0x6be   : > { %v1334_v40 = vpop.f32.mrb[36].mxu1 }
 0x6bf   : > { %v1440_v41 = vmul.f32 0.5, %v1334_v40  ;;  %v3501_v42 = vpop.f32.mrb[37].mxu1 }
 0x6c0   : > { %v1337_v43 = vpop.f32.mrb[38].mxu1 }
 0x6c1   : > { %v3502_v44 = vpop.f32.mrb[39].mxu1  ;;  %v1443_v45 = vsel %vm442_vm4, %v1440_v41, -inf }
 0x6c2   : > { %1444 = vmax.xlane.f32.xlu1 %v1443_v45 }
 0x6c3   : > { %v1384_v46 = vpop.f32.mrb[40].mxu0 }
 0x6c4   : > { %v1441_v47 = vmul.f32 0.5, %v1384_v46  ;;  %v3507_v48 = vpop.f32.mrb[41].mxu0 }
 0x6c5   : > { %v1387_v49 = vpop.f32.mrb[42].mxu0 }
 0x6c6   : > { %v3508_v50 = vpop.f32.mrb[43].mxu0  ;;  %v1446_v53 = vsel %vm442_vm4, %v1441_v47, -inf  ;;  %v1434_v54 = vpop.f32.mrb[40].mxu1 }
 0x6c7   : > { %1447 = vmax.xlane.f32.xlu0 %v1446_v53  ;;  %v1442_v56 = vmul.f32 0.5, %v1434_v54  ;;  %v3513_v58 = vpop.f32.mrb[41].mxu1 }
 0x6c8   : > { %v1437_v60 = vpop.f32.mrb[42].mxu1 }
 0x6c9   : > { %v3514_v61 = vpop.f32.mrb[43].mxu1  ;;  %v1449_v0 = vsel %vm442_vm4, %v1442_v56, -inf }
 0x6cb   : > { %1450 = vmax.xlane.f32.xlu0 %v1449_v0 }
 0x6d3   : > { %1569 = vrot.lane.b32.xlu1 %v3955_v6, %s3882_s10  ;;  %s3209_s10 = sshll.u32 %s4540_s19, 3 }
 0x6d7   : > { %1625 = vrot.lane.b32.xlu1 %v3957_v8, %s3883_s11 }
 0x6db   : > { %1623 = vrot.lane.b32.xlu1 %v3957_v8, %s3884_s12 }
 0x6df   : > { %1673 = vrot.lane.b32.xlu1 %v3961_v11, %s3884_s12 }
 0x6e1   : > { %1675 = vrot.lane.b32.xlu0 %v3961_v11, %s3883_s11 }
 0x6e3   : > { %1854 = vrot.lane.b32.xlu1 %v3961_v11, %s3885_s13 }
 0x6e5   : > { %1725 = vrot.lane.b32.xlu0 %v3955_v6, %s3883_s11 }
 0x6e7   : > { %1902 = vrot.lane.b32.xlu1 %v3955_v6, %s3885_s13 }
 0x6e9   : > { %1723 = vrot.lane.b32.xlu0 %v3955_v6, %s3884_s12 }
 0x6ed   : > { %1806 = vrot.lane.b32.xlu0 %v3957_v8, %s3885_s13 }
 0x74f   : > { %v1445_v1 = vpop.xlane.xlu1 %1444 }
 0x750   : > { %v1452_v2 = vsub.f32 %v1440_v41, %v1445_v1 }
 0x752   : > { %v1455_v5 = vmul.f32 1.442695, %v1452_v2 }
 0x753   : > { %v1570_v19 = vpop.permute.xlu1 %1569 }
 0x754   : > { %3784 = vpow2.f32 %v1455_v5  ;;  %v1448_v7 = vpop.xlane.xlu0 %1447  ;;  %v1575_v26 = vsel %vm478_vm3, %v1570_v19, 0 }
 0x755   : > { %v1453_v10 = vsub.f32 %v1441_v47, %v1448_v7 }
 0x757   : > { %v1457_v13 = vmul.f32 1.442695, %v1453_v10  ;;  %v1626_v27 = vpop.permute.xlu1 %1625 }
 0x758   : > { %v1451_v16 = vpop.xlane.xlu0 %1450  ;;  %v1631_v33 = vsel %vm296_vm2, %v1626_v27, 0 }
 0x759   : > { %3786 = vpow2.f32 %v1457_v13  ;;  %v1454_v17 = vsub.f32 %v1442_v56, %v1451_v16 }
 0x75b   : > { %v1459_v21 = vmul.f32 1.442695, %v1454_v17  ;;  %v1624_v35 = vpop.permute.xlu1 %1623 }
 0x75c   : > { %v1676_v22 = vpop.permute.xlu0 %1675 }
 0x75d   : > { %3788 = vpow2.f32 %v1459_v21  ;;  %v1681_v39 = vsel %vm296_vm2, %v1676_v22, 0 }
 0x75e   : > { %v4190_v23 = vpop.eup %3784 }
 0x75f   : > { %v1470_v25 = vpack.c.bf16 %v4190_v23, %v4190_v23  ;;  %v1674_v40 = vpop.permute.xlu1 %1673 }
 0x760   : > { %v1726_v30 = vpop.permute.xlu0 %1725 }
 0x761   : > { %3518 = vmatmul.mubr.msk.bf16.vlgmr.msra.gmra.mrb[44].mxu0 %vm442_vm4, %v1470_v25  ;;  %v1731_v41 = vsel %vm296_vm2, %v1726_v30, 0 }
 0x762   : > { %3528 = vmatpush3.bf16.msra.mxu0 %v1575_v26  ;;  %3529 = vmatprep.mubr.msk.bf16.mxu0 %vm3871_vm1, %v3870_v4 }
 0x763   : > { %v4198_v29 = vpop.eup %3786  ;;  %3539 = vmatprep.subr.bf16.mxu0 %v3870_v4  ;;  %v1855_v44 = vpop.permute.xlu1 %1854 }
 0x764   : > { %v1471_v31 = vpack.c.bf16 %v4198_v29, %v4198_v29  ;;  %v1724_v38 = vpop.permute.xlu0 %1723  ;;  %v1860_v45 = vsel %vm478_vm3, %v1855_v44, 0 }
 0x766   : > { %3524 = vmatmul.mubr.msk.bf16.vlgmr.msra.gmra.mrb[44].mxu1 %vm442_vm4, %v1471_v31 }
 0x767   : > { %v4205_v34 = vpop.eup %3788  ;;  %3534 = vmatpush3.bf16.xpose.msra.mxu1 %v1631_v33  ;;  %3535 = vmatprep.mubr.msk.bf16.mxu1 %vm3871_vm1, %v3870_v4 }
 0x768   : > { %v1472_v37 = vpack.c.bf16 %v4205_v34, %v4205_v34  ;;  %3545 = vmatprep.subr.bf16.mxu1 %v3870_v4  ;;  %v1807_v42 = vpop.permute.xlu0 %1806 }
 0x769   : > { %v1812_v43 = vsel %vm478_vm3, %v1807_v42, 0 }
 0x76a   : > { %3530 = vmatmul.mubr.msk.bf16.vlgmr.msra.gmra.mrb[48].mxu0 %vm442_vm4, %v1472_v37  ;;  %v1903_v37 = vpop.permute.xlu1 %1902 }
 0x76b   : > { %3540 = vmatpush3.bf16.xpose.msra.mxu0 %v1681_v39  ;;  %3541 = vmatprep.mubr.msk.bf16.mxu0 %vm3871_vm1, %v3870_v4 }
 0x76c   : > { %3551 = vmatprep.subr.bf16.mxu0 %v3870_v4 }
 0x76e   : > { %3536 = vmatmul.mubr.msk.bf16.vlgmr.msra.gmra.mrb[48].mxu1 %vm296_vm2, %v1624_v35 }
 0x76f   : > { %3546 = vmatpush3.bf16.xpose.msra.mxu1 %v1731_v41  ;;  %3547 = vmatprep.mubr.msk.bf16.mxu1 %vm3871_vm1, %v3870_v4 }
 0x770   : > { %3557 = vmatprep.subr.bf16.mxu1 %v3870_v4 }
 0x772   : > { %3542 = vmatmul.mubr.msk.bf16.vlgmr.msra.gmra.mrb[52].mxu0 %vm296_vm2, %v1674_v40 }
 0x773   : > { %3552 = vmatpush3.bf16.msra.mxu0 %v1812_v43  ;;  %3553 = vmatprep.mubr.msk.bf16.mxu0 %vm3871_vm1, %v3870_v4 }
 0x774   : > { %3563 = vmatprep.subr.bf16.mxu0 %v3870_v4 }
 0x776   : > { %3548 = vmatmul.mubr.msk.bf16.vlgmr.msra.gmra.mrb[52].mxu1 %vm296_vm2, %v1724_v38 }
 0x777   : > { %3558 = vmatpush3.bf16.msra.mxu1 %v1860_v45  ;;  %3559 = vmatprep.mubr.msk.bf16.mxu1 %vm3871_vm1, %v3870_v4 }
 0x778   : > { %3569 = vmatprep.subr.bf16.mxu1 %v3870_v4 }
 0x834   : > { %v4232_v46 = vpop.f32.mrb[44].mxu0 }
 0x835   : > { %v3519_v47 = vpop.f32.mrb[45].mxu0 }
 0x836   : > { %v1518_v48 = vpop.f32.mrb[46].mxu0 }
 0x837   : > { %v3520_v49 = vpop.f32.mrb[47].mxu0 }
 0x839   : > { %v4234_v50 = vpop.f32.mrb[44].mxu1 }
 0x83a   : > { %v3525_v53 = vpop.f32.mrb[45].mxu1 }
 0x83b   : > { %v1566_v54 = vpop.f32.mrb[46].mxu1 }
 0x83c   : > { %v3526_v56 = vpop.f32.mrb[47].mxu1 }
 0x83d   : > { %v4236_v58 = vpop.f32.mrb[48].mxu0  ;;  %v1908_v56 = vsel %vm478_vm3, %v1903_v37, 0 }
 0x83e   : > { %v3531_v60 = vpop.f32.mrb[49].mxu0 }
 0x83f   : > { %v1614_v61 = vpop.f32.mrb[50].mxu0 }
 0x840   : > { %v3532_v0 = vpop.f32.mrb[51].mxu0 }
 0x841   : > { %v1667_v1 = vpop.f32.mrb[48].mxu1 }
 0x842   : > { %v1773_v2 = vmul.f32 0.5, %v1667_v1  ;;  %v3537_v5 = vpop.f32.mrb[49].mxu1 }
 0x843   : > { %v1670_v7 = vpop.f32.mrb[50].mxu1 }
 0x844   : > { %v3538_v10 = vpop.f32.mrb[51].mxu1  ;;  %v1776_v13 = vsel %vm442_vm4, %v1773_v2, -inf }
 0x845   : > { %1777 = vmax.xlane.f32.xlu1 %v1776_v13  ;;  %v1717_v16 = vpop.f32.mrb[52].mxu0 }
 0x846   : > { %v1774_v17 = vmul.f32 0.5, %v1717_v16  ;;  %v3543_v19 = vpop.f32.mrb[53].mxu0 }
 0x847   : > { %v1720_v21 = vpop.f32.mrb[54].mxu0 }
 0x848   : > { %v3544_v22 = vpop.f32.mrb[55].mxu0  ;;  %v1779_v25 = vsel %vm442_vm4, %v1774_v17, -inf }
 0x849   : > { %1780 = vmax.xlane.f32.xlu0 %v1779_v25  ;;  %v1767_v26 = vpop.f32.mrb[52].mxu1 }
 0x84a   : > { %v1775_v27 = vmul.f32 0.5, %v1767_v26  ;;  %v3549_v30 = vpop.f32.mrb[53].mxu1 }
 0x84b   : > { %v1770_v31 = vpop.f32.mrb[54].mxu1 }
 0x84c   : > { %v3550_v33 = vpop.f32.mrb[55].mxu1  ;;  %v1782_v35 = vsel %vm442_vm4, %v1775_v27, -inf }
 0x84d   : > { %1783 = vmax.xlane.f32.xlu0 %v1782_v35 }
 0x856   : > { %1958 = vrot.lane.b32.xlu1 %v3957_v8, %s3886_s14 }
 0x85a   : > { %1956 = vrot.lane.b32.xlu1 %v3957_v8, %s3887_s16 }
 0x85e   : > { %2006 = vrot.lane.b32.xlu1 %v3961_v11, %s3887_s16 }
 0x862   : > { %2139 = vrot.lane.b32.xlu1 %v3957_v8, %s3888_s17 }
 0x863   : > { %2008 = vrot.lane.b32.xlu0 %v3961_v11, %s3886_s14 }
 0x867   : > { %2058 = vrot.lane.b32.xlu0 %v3955_v6, %s3886_s14 }
 0x86b   : > { %2056 = vrot.lane.b32.xlu0 %v3955_v6, %s3887_s16  ;;  %s199_s16 = scalar_lea.vmem %s4538_s4, %s3209_s10 }
 0x86f   : > { %2187 = vrot.lane.b32.xlu0 %v3961_v11, %s3888_s17 }
 0x8d2   : > { %v1778_v38 = vpop.xlane.xlu1 %1777 }
 0x8d3   : > { %v1785_v39 = vsub.f32 %v1773_v2, %v1778_v38 }
 0x8d5   : > { %v1788_v40 = vmul.f32 1.442695, %v1785_v39 }
 0x8d6   : > { %v1781_v41 = vpop.xlane.xlu0 %1780  ;;  %v1959_v48 = vpop.permute.xlu1 %1958 }
 0x8d7   : > { %3790 = vpow2.f32 %v1788_v40  ;;  %v1786_v42 = vsub.f32 %v1774_v17, %v1781_v41  ;;  %v1964_v1 = vsel %vm296_vm2, %v1959_v48, 0 }
 0x8d9   : > { %v1790_v43 = vmul.f32 1.442695, %v1786_v42 }
 0x8da   : > { %v1784_v44 = vpop.xlane.xlu0 %1783  ;;  %v1957_v61 = vpop.permute.xlu1 %1956 }
 0x8db   : > { %3792 = vpow2.f32 %v1790_v43  ;;  %v1787_v45 = vsub.f32 %v1775_v27, %v1784_v44 }
 0x8dd   : > { %v1792_v47 = vmul.f32 1.442695, %v1787_v45 }
 0x8de   : > { %v2009_v54 = vpop.permute.xlu0 %2008  ;;  %v2007_v10 = vpop.permute.xlu1 %2006 }
 0x8df   : > { %3794 = vpow2.f32 %v1792_v47  ;;  %v2014_v13 = vsel %vm296_vm2, %v2009_v54, 0 }
 0x8e1   : > { %v4251_v49 = vpop.eup %3790 }
 0x8e2   : > { %v1803_v53 = vpack.c.bf16 %v4251_v49, %v4251_v49  ;;  %v2059_v5 = vpop.permute.xlu0 %2058  ;;  %v2140_v19 = vpop.permute.xlu1 %2139 }
 0x8e3   : > { %v2064_v17 = vsel %vm296_vm2, %v2059_v5, 0  ;;  %v2145_v21 = vsel %vm478_vm3, %v2140_v19, 0 }
 0x8e4   : > { %3554 = vmatmul.mubr.msk.bf16.vlgmr.msra.gmra.mrb[56].mxu0 %vm442_vm4, %v1803_v53 }
 0x8e5   : > { %v4257_v60 = vpop.eup %3792  ;;  %3564 = vmatpush3.bf16.msra.mxu0 %v1908_v56  ;;  %3565 = vmatprep.mubr.msk.bf16.mxu0 %vm3871_vm1, %v3870_v4 }
 0x8e6   : > { %v1804_v0 = vpack.c.bf16 %v4257_v60, %v4257_v60  ;;  %3575 = vmatprep.subr.bf16.mxu0 %v3870_v4  ;;  %v2057_v16 = vpop.permute.xlu0 %2056 }
 0x8e8   : > { %3560 = vmatmul.mubr.msk.bf16.vlgmr.msra.gmra.mrb[56].mxu1 %vm442_vm4, %v1804_v0 }
 0x8e9   : > { %v4266_v2 = vpop.eup %3794  ;;  %3570 = vmatpush3.bf16.xpose.msra.mxu1 %v1964_v1  ;;  %3571 = vmatprep.mubr.msk.bf16.mxu1 %vm3871_vm1, %v3870_v4 }
 0x8ea   : > { %v1805_v7 = vpack.c.bf16 %v4266_v2, %v4266_v2  ;;  %3581 = vmatprep.subr.bf16.mxu1 %v3870_v4  ;;  %v2188_v22 = vpop.permute.xlu0 %2187 }
 0x8eb   : > { %v2193_v25 = vsel %vm478_vm3, %v2188_v22, 0 }
 0x8ec   : > { %3566 = vmatmul.mubr.msk.bf16.vlgmr.msra.gmra.mrb[60].mxu0 %vm442_vm4, %v1805_v7 }
 0x8ed   : > { %3577 = vmatprep.mubr.msk.bf16.mxu0 %vm3871_vm1, %v3870_v4 }
 0x8ee   : > { %3576 = vmatpush3.bf16.xpose.msra.mxu0 %v2014_v13 }
 0x8ef   : > { %3587 = vmatprep.subr.bf16.mxu0 %v3870_v4 }
 0x8f0   : > { %3572 = vmatmul.mubr.msk.bf16.vlgmr.msra.gmra.mrb[60].mxu1 %vm296_vm2, %v1957_v61 }
 0x8f1   : > { %3582 = vmatpush3.bf16.xpose.msra.mxu1 %v2064_v17  ;;  %3583 = vmatprep.mubr.msk.bf16.mxu1 %vm3871_vm1, %v3870_v4 }
 0x8f2   : > { %3593 = vmatprep.subr.bf16.mxu1 %v3870_v4 }
 0x8f5   : > { %3578 = vmatmul.mubr.msk.bf16.vlgmr.msra.gmra.mrb[64].mxu0 %vm296_vm2, %v2007_v10 }
 0x8f6   : > { %3588 = vmatpush3.bf16.msra.mxu0 %v2145_v21  ;;  %3589 = vmatprep.mubr.msk.bf16.mxu0 %vm3871_vm1, %v3870_v4 }
 0x8f7   : > { %3599 = vmatprep.subr.bf16.mxu0 %v3870_v4 }
 0x8f8   : > { %3584 = vmatmul.mubr.msk.bf16.vlgmr.msra.gmra.mrb[64].mxu1 %vm296_vm2, %v2057_v16 }
 0x8f9   : > { %3594 = vmatpush3.bf16.msra.mxu1 %v2193_v25  ;;  %3595 = vmatprep.mubr.msk.bf16.mxu1 %vm3871_vm1, %v3870_v4 }
 0x8fa   : > { %3605 = vmatprep.subr.bf16.mxu1 %v3870_v4 }
 0x9b7   : > { %v4293_v26 = vpop.f32.mrb[56].mxu0 }
 0x9b8   : > { %v3555_v27 = vpop.f32.mrb[57].mxu0 }
 0x9b9   : > { %v1851_v30 = vpop.f32.mrb[58].mxu0 }
 0x9ba   : > { %v3556_v31 = vpop.f32.mrb[59].mxu0 }
 0x9bb   : > { %v4295_v33 = vpop.f32.mrb[56].mxu1 }
 0x9bc   : > { %v3561_v35 = vpop.f32.mrb[57].mxu1 }
 0x9bd   : > { %v1899_v37 = vpop.f32.mrb[58].mxu1 }
 0x9be   : > { %v3562_v38 = vpop.f32.mrb[59].mxu1 }
 0x9bf   : > { %v4297_v39 = vpop.f32.mrb[60].mxu0 }
 0x9c0   : > { %v3567_v40 = vpop.f32.mrb[61].mxu0 }
 0x9c1   : > { %v1947_v41 = vpop.f32.mrb[62].mxu0 }
 0x9c2   : > { %v3568_v42 = vpop.f32.mrb[63].mxu0 }
 0x9c3   : > { %v2000_v43 = vpop.f32.mrb[60].mxu1 }
 0x9c4   : > { %v2106_v44 = vmul.f32 0.5, %v2000_v43  ;;  %v3573_v45 = vpop.f32.mrb[61].mxu1 }
 0x9c5   : > { %v2003_v47 = vpop.f32.mrb[62].mxu1 }
 0x9c6   : > { %v3574_v48 = vpop.f32.mrb[63].mxu1  ;;  %v2109_v53 = vsel %vm442_vm4, %v2106_v44, -inf }
 0x9c7   : > { %2110 = vmax.xlane.f32.xlu1 %v2109_v53 }
 0x9c8   : > { %v2050_v54 = vpop.f32.mrb[64].mxu0 }
 0x9c9   : > { %v2107_v56 = vmul.f32 0.5, %v2050_v54  ;;  %v3579_v61 = vpop.f32.mrb[65].mxu0 }
 0x9ca   : > { %v2053_v0 = vpop.f32.mrb[66].mxu0 }
 0x9cb   : > { %v3580_v1 = vpop.f32.mrb[67].mxu0  ;;  %v2112_v5 = vsel %vm442_vm4, %v2107_v56, -inf  ;;  %v2100_v7 = vpop.f32.mrb[64].mxu1 }
 0x9cc   : > { %2113 = vmax.xlane.f32.xlu0 %v2112_v5  ;;  %v2108_v10 = vmul.f32 0.5, %v2100_v7  ;;  %v3585_v13 = vpop.f32.mrb[65].mxu1 }
 0x9cd   : > { %v2103_v16 = vpop.f32.mrb[66].mxu1 }
 0x9ce   : > { %v3586_v17 = vpop.f32.mrb[67].mxu1  ;;  %v2115_v19 = vsel %vm442_vm4, %v2108_v10, -inf }
 0x9d0   : > { %2116 = vmax.xlane.f32.xlu0 %v2115_v19 }
 0x9d8   : > { %2235 = vrot.lane.b32.xlu1 %v3955_v6, %s3888_s17 }
 0x9dc   : > { %2291 = vrot.lane.b32.xlu1 %v3957_v8, %s3889_s18 }
 0x9e0   : > { %2289 = vrot.lane.b32.xlu1 %v3957_v8, %s3890_s20 }
 0x9e4   : > { %2339 = vrot.lane.b32.xlu1 %v3961_v11, %s3890_s20 }
 0x9e6   : > { %2341 = vrot.lane.b32.xlu0 %v3961_v11, %s3889_s18 }
 0x9e8   : > { %2520 = vrot.lane.b32.xlu1 %v3961_v11, %s3891_s21 }
 0x9ea   : > { %2391 = vrot.lane.b32.xlu0 %v3955_v6, %s3889_s18 }
 0x9ec   : > { %2568 = vrot.lane.b32.xlu1 %v3955_v6, %s3891_s21 }
 0x9ee   : > { %2389 = vrot.lane.b32.xlu0 %v3955_v6, %s3890_s20 }
 0x9f2   : > { %2472 = vrot.lane.b32.xlu0 %v3957_v8, %s3891_s21 }
 0xa54   : > { %v2111_v21 = vpop.xlane.xlu1 %2110 }
 0xa55   : > { %v2118_v22 = vsub.f32 %v2106_v44, %v2111_v21 }
 0xa57   : > { %v2121_v25 = vmul.f32 1.442695, %v2118_v22 }
 0xa58   : > { %v2236_v38 = vpop.permute.xlu1 %2235 }
 0xa59   : > { %3796 = vpow2.f32 %v2121_v25  ;;  %v2114_v27 = vpop.xlane.xlu0 %2113  ;;  %v2241_v45 = vsel %vm478_vm3, %v2236_v38, 0 }
 0xa5a   : > { %v2119_v30 = vsub.f32 %v2107_v56, %v2114_v27 }
 0xa5c   : > { %v2123_v31 = vmul.f32 1.442695, %v2119_v30  ;;  %v2292_v44 = vpop.permute.xlu1 %2291 }
 0xa5d   : > { %v2117_v35 = vpop.xlane.xlu0 %2116  ;;  %v2297_v54 = vsel %vm296_vm2, %v2292_v44, 0 }
 0xa5e   : > { %3798 = vpow2.f32 %v2123_v31  ;;  %v2120_v37 = vsub.f32 %v2108_v10, %v2117_v35 }
 0xa60   : > { %v2125_v40 = vmul.f32 1.442695, %v2120_v37  ;;  %v2290_v61 = vpop.permute.xlu1 %2289 }
 0xa61   : > { %v2342_v41 = vpop.permute.xlu0 %2341 }
 0xa62   : > { %3800 = vpow2.f32 %v2125_v40  ;;  %v2347_v5 = vsel %vm296_vm2, %v2342_v41, 0 }
 0xa63   : > { %v4313_v42 = vpop.eup %3796 }
 0xa64   : > { %v2136_v43 = vpack.c.bf16 %v4313_v42, %v4313_v42  ;;  %v2340_v7 = vpop.permute.xlu1 %2339 }
 0xa65   : > { %v2392_v48 = vpop.permute.xlu0 %2391 }
 0xa66   : > { %3590 = vmatmul.mubr.msk.bf16.vlgmr.msra.gmra.mrb[68].mxu0 %vm442_vm4, %v2136_v43  ;;  %v2397_v10 = vsel %vm296_vm2, %v2392_v48, 0 }
 0xa67   : > { %3600 = vmatpush3.bf16.msra.mxu0 %v2241_v45  ;;  %3601 = vmatprep.mubr.msk.bf16.mxu0 %vm3871_vm1, %v3870_v4 }
 0xa68   : > { %v4321_v47 = vpop.eup %3798  ;;  %3611 = vmatprep.subr.bf16.mxu0 %v3870_v4  ;;  %v2521_v17 = vpop.permute.xlu1 %2520 }
 0xa69   : > { %v2137_v53 = vpack.c.bf16 %v4321_v47, %v4321_v47  ;;  %v2390_v1 = vpop.permute.xlu0 %2389  ;;  %v2526_v19 = vsel %vm478_vm3, %v2521_v17, 0 }
 0xa6b   : > { %3596 = vmatmul.mubr.msk.bf16.vlgmr.msra.gmra.mrb[68].mxu1 %vm442_vm4, %v2137_v53 }
 0xa6c   : > { %v4328_v56 = vpop.eup %3800  ;;  %3606 = vmatpush3.bf16.xpose.msra.mxu1 %v2297_v54  ;;  %3607 = vmatprep.mubr.msk.bf16.mxu1 %vm3871_vm1, %v3870_v4 }
 0xa6d   : > { %v2138_v0 = vpack.c.bf16 %v4328_v56, %v4328_v56  ;;  %3617 = vmatprep.subr.bf16.mxu1 %v3870_v4  ;;  %v2473_v13 = vpop.permute.xlu0 %2472 }
 0xa6e   : > { %v2478_v16 = vsel %vm478_vm3, %v2473_v13, 0 }
 0xa6f   : > { %3602 = vmatmul.mubr.msk.bf16.vlgmr.msra.gmra.mrb[72].mxu0 %vm442_vm4, %v2138_v0 }
 0xa70   : > { %3612 = vmatpush3.bf16.xpose.msra.mxu0 %v2347_v5  ;;  %3613 = vmatprep.mubr.msk.bf16.mxu0 %vm3871_vm1, %v3870_v4 }
 0xa71   : > { %3623 = vmatprep.subr.bf16.mxu0 %v3870_v4 }
 0xa73   : > { %3608 = vmatmul.mubr.msk.bf16.vlgmr.msra.gmra.mrb[72].mxu1 %vm296_vm2, %v2290_v61 }
 0xa74   : > { %3618 = vmatpush3.bf16.xpose.msra.mxu1 %v2397_v10  ;;  %3619 = vmatprep.mubr.msk.bf16.mxu1 %vm3871_vm1, %v3870_v4 }
 0xa75   : > { %3629 = vmatprep.subr.bf16.mxu1 %v3870_v4 }
 0xa77   : > { %3614 = vmatmul.mubr.msk.bf16.vlgmr.msra.gmra.mrb[76].mxu0 %vm296_vm2, %v2340_v7 }
 0xa78   : > { %3624 = vmatpush3.bf16.msra.mxu0 %v2478_v16  ;;  %3625 = vmatprep.mubr.msk.bf16.mxu0 %vm3871_vm1, %v3870_v4 }
 0xa79   : > { %3635 = vmatprep.subr.bf16.mxu0 %v3870_v4 }
 0xa7b   : > { %3620 = vmatmul.mubr.msk.bf16.vlgmr.msra.gmra.mrb[76].mxu1 %vm296_vm2, %v2390_v1 }
 0xa7c   : > { %3630 = vmatpush3.bf16.msra.mxu1 %v2526_v19  ;;  %3631 = vmatprep.mubr.msk.bf16.mxu1 %vm3871_vm1, %v3870_v4 }
 0xa7d   : > { %3641 = vmatprep.subr.bf16.mxu1 %v3870_v4 }
 0xb39   : > { %v4355_v21 = vpop.f32.mrb[68].mxu0 }
 0xb3a   : > { %v3591_v22 = vpop.f32.mrb[69].mxu0 }
 0xb3b   : > { %v2184_v25 = vpop.f32.mrb[70].mxu0 }
 0xb3c   : > { %v3592_v27 = vpop.f32.mrb[71].mxu0 }
 0xb3e   : > { %v4357_v30 = vpop.f32.mrb[68].mxu1 }
 0xb3f   : > { %v3597_v31 = vpop.f32.mrb[69].mxu1 }
 0xb40   : > { %v2232_v35 = vpop.f32.mrb[70].mxu1  ;;  %v2569_v31 = vpop.permute.xlu1 %2568 }
 0xb41   : > { %v3598_v37 = vpop.f32.mrb[71].mxu1 }
 0xb42   : > { %v4359_v38 = vpop.f32.mrb[72].mxu0 }
 0xb43   : > { %v3603_v40 = vpop.f32.mrb[73].mxu0 }
 0xb44   : > { %v2280_v41 = vpop.f32.mrb[74].mxu0 }
 0xb45   : > { %v3604_v43 = vpop.f32.mrb[75].mxu0 }
 0xb46   : > { %v2333_v45 = vpop.f32.mrb[72].mxu1 }
 0xb47   : > { %v2439_v44 = vmul.f32 0.5, %v2333_v45  ;;  %v3609_v48 = vpop.f32.mrb[73].mxu1 }
 0xb48   : > { %v2336_v53 = vpop.f32.mrb[74].mxu1 }
 0xb49   : > { %v3610_v54 = vpop.f32.mrb[75].mxu1  ;;  %v2442_v61 = vsel %vm442_vm4, %v2439_v44, -inf }
 0xb4a   : > { %2443 = vmax.xlane.f32.xlu1 %v2442_v61  ;;  %v2383_v0 = vpop.f32.mrb[76].mxu0 }
 0xb4b   : > { %v2440_v1 = vmul.f32 0.5, %v2383_v0  ;;  %v3615_v5 = vpop.f32.mrb[77].mxu0 }
 0xb4c   : > { %v2386_v7 = vpop.f32.mrb[78].mxu0  ;;  %v2574_v5 = vsel %vm478_vm3, %v2569_v31, 0 }
 0xb4d   : > { %v3616_v10 = vpop.f32.mrb[79].mxu0  ;;  %v2445_v13 = vsel %vm442_vm4, %v2440_v1, -inf }
 0xb4e   : > { %2446 = vmax.xlane.f32.xlu0 %v2445_v13  ;;  %v2433_v16 = vpop.f32.mrb[76].mxu1 }
 0xb4f   : > { %v2441_v17 = vmul.f32 0.5, %v2433_v16  ;;  %v3621_v19 = vpop.f32.mrb[77].mxu1 }
 0xb50   : > { %v2436_v22 = vpop.f32.mrb[78].mxu1 }
 0xb51   : > { %v3622_v25 = vpop.f32.mrb[79].mxu1  ;;  %v2448_v27 = vsel %vm442_vm4, %v2441_v17, -inf }
 0xb52   : > { %2449 = vmax.xlane.f32.xlu0 %v2448_v27 }
 0xb5b   : > { %2624 = vrot.lane.b32.xlu1 %v3957_v8, %s3892_s22 }
 0xb5f   : > { %2622 = vrot.lane.b32.xlu1 %v3957_v8, %s3893_s23 }
 0xb63   : > { %2672 = vrot.lane.b32.xlu1 %v3961_v11, %s3893_s23 }
 0xb67   : > { %2805 = vrot.lane.b32.xlu1 %v3957_v8, %s3894_s24 }
 0xb68   : > { %2674 = vrot.lane.b32.xlu0 %v3961_v11, %s3892_s22 }
 0xb6c   : > { %2724 = vrot.lane.b32.xlu0 %v3955_v6, %s3892_s22 }
 0xb70   : > { %2722 = vrot.lane.b32.xlu0 %v3955_v6, %s3893_s23 }
 0xbd7   : > { %v2444_v35 = vpop.xlane.xlu1 %2443 }
 0xbd8   : > { %v2451_v37 = vsub.f32 %v2439_v44, %v2444_v35 }
 0xbda   : > { %v2454_v40 = vmul.f32 1.442695, %v2451_v37 }
 0xbdb   : > { %v2447_v41 = vpop.xlane.xlu0 %2446  ;;  %v2625_v8 = vpop.permute.xlu1 %2624 }
 0xbdc   : > { %3802 = vpow2.f32 %v2454_v40  ;;  %v2452_v43 = vsub.f32 %v2440_v1, %v2447_v41  ;;  %v2630_v13 = vsel %vm296_vm2, %v2625_v8, 0 }
 0xbde   : > { %v2456_v45 = vmul.f32 1.442695, %v2452_v43 }
 0xbdf   : > { %v2450_v48 = vpop.xlane.xlu0 %2449  ;;  %v2623_v1 = vpop.permute.xlu1 %2622 }
 0xbe0   : > { %3804 = vpow2.f32 %v2456_v45  ;;  %v2453_v53 = vsub.f32 %v2441_v17, %v2450_v48 }
 0xbe2   : > { %v2458_v54 = vmul.f32 1.442695, %v2453_v53 }
 0xbe3   : > { %v2675_v10 = vpop.permute.xlu0 %2674  ;;  %v2673_v19 = vpop.permute.xlu1 %2672 }
 0xbe4   : > { %3806 = vpow2.f32 %v2458_v54  ;;  %v2680_v22 = vsel %vm296_vm2, %v2675_v10, 0 }
 0xbe6   : > { %v4372_v61 = vpop.eup %3802 }
 0xbe7   : > { %v2469_v0 = vpack.c.bf16 %v4372_v61, %v4372_v61  ;;  %v2725_v25 = vpop.permute.xlu0 %2724  ;;  %v2806_v31 = vpop.permute.xlu1 %2805 }
 0xbe8   : > { %v2730_v27 = vsel %vm296_vm2, %v2725_v25, 0  ;;  %v2811_v35 = vsel %vm478_vm3, %v2806_v31, 0 }
 0xbe9   : > { %3626 = vmatmul.mubr.msk.bf16.vlgmr.msra.gmra.mrb[80].mxu0 %vm442_vm4, %v2469_v0 }
 0xbea   : > { %v4378_v44 = vpop.eup %3804  ;;  %3636 = vmatpush3.bf16.msra.mxu0 %v2574_v5  ;;  %3637 = vmatprep.mubr.msk.bf16.mxu0 %vm3871_vm1, %v3870_v4 }
 0xbeb   : > { %v2470_v7 = vpack.c.bf16 %v4378_v44, %v4378_v44  ;;  %3647 = vmatprep.subr.bf16.mxu0 %v3870_v4  ;;  %v2723_v37 = vpop.permute.xlu0 %2722 }
 0xbed   : > { %3632 = vmatmul.mubr.msk.bf16.vlgmr.msra.gmra.mrb[80].mxu1 %vm442_vm4, %v2470_v7 }
 0xbee   : > { %v4387_v16 = vpop.eup %3806  ;;  %3642 = vmatpush3.bf16.xpose.msra.mxu1 %v2630_v13  ;;  %3643 = vmatprep.mubr.msk.bf16.mxu1 %vm3871_vm1, %v3870_v4 }
 0xbef   : > { %v2471_v17 = vpack.c.bf16 %v4387_v16, %v4387_v16  ;;  %3653 = vmatprep.subr.bf16.mxu1 %v3870_v4 }
 0xbf1   : > { %3638 = vmatmul.mubr.msk.bf16.vlgmr.msra.gmra.mrb[84].mxu0 %vm442_vm4, %v2471_v17 }
 0xbf2   : > { %3649 = vmatprep.mubr.msk.bf16.mxu0 %vm3871_vm1, %v3870_v4 }
 0xbf3   : > { %3648 = vmatpush3.bf16.xpose.msra.mxu0 %v2680_v22 }
 0xbf4   : > { %3659 = vmatprep.subr.bf16.mxu0 %v3870_v4 }
 0xbf5   : > { %3644 = vmatmul.mubr.msk.bf16.vlgmr.msra.gmra.mrb[84].mxu1 %vm296_vm2, %v2623_v1 }
 0xbf6   : > { %3654 = vmatpush3.bf16.xpose.msra.mxu1 %v2730_v27  ;;  %3655 = vmatprep.mubr.msk.bf16.mxu1 %vm3871_vm1, %v3870_v4 }
 0xbf7   : > { %3665 = vmatprep.subr.bf16.mxu1 %v3870_v4 }
 0xbfa   : > { %3650 = vmatmul.mubr.msk.bf16.vlgmr.msra.gmra.mrb[88].mxu0 %vm296_vm2, %v2673_v19 }
 0xbfb   : > { %3660 = vmatpush3.bf16.msra.mxu0 %v2811_v35  ;;  %3661 = vmatprep.mubr.msk.bf16.mxu0 %vm3871_vm1, %v3870_v4 }
 0xbfc   : > { %3671 = vmatprep.subr.bf16.mxu0 %v3870_v4 }
 0xbfd   : > { %3656 = vmatmul.mubr.msk.bf16.vlgmr.msra.gmra.mrb[88].mxu1 %vm296_vm2, %v2723_v37 }
 0xbfe   : > { %3667 = vmatprep.mubr.msk.bf16.mxu1 %vm3871_vm1, %v3870_v4 }
 0xcbc   : > { %v4412_v40 = vpop.f32.mrb[80].mxu0 }
 0xcbd   : > { %v3627_v41 = vpop.f32.mrb[81].mxu0 }
 0xcbe   : > { %v2517_v43 = vpop.f32.mrb[82].mxu0 }
 0xcbf   : > { %v3628_v45 = vpop.f32.mrb[83].mxu0 }
 0xcc0   : > { %v4414_v48 = vpop.f32.mrb[80].mxu1 }
 0xcc1   : > { %v3633_v53 = vpop.f32.mrb[81].mxu1 }
 0xcc2   : > { %v2565_v54 = vpop.f32.mrb[82].mxu1 }
 0xcc3   : > { %v3634_v8 = vpop.f32.mrb[83].mxu1 }
 0xcc4   : > { %v4416_v0 = vpop.f32.mrb[84].mxu0 }
 0xcc5   : > { %v3639_v5 = vpop.f32.mrb[85].mxu0 }
 0xcc6   : > { %v2613_v1 = vpop.f32.mrb[86].mxu0 }
 0xcc7   : > { %v3640_v7 = vpop.f32.mrb[87].mxu0 }
 0xcc8   : > { %v2666_v10 = vpop.f32.mrb[84].mxu1  ;;  %v795_v7 = vsel %vm442_vm4, %v4067_v52, 0.0  ;;  %v1794_v52 = vsel %vm442_vm4, %v4251_v49, 0.0  ;;  %v1797_v49 = vsel %vm442_vm4, %v4257_v60, 0.0 }
 0xcc9   : > { %v2772_v13 = vmul.f32 0.5, %v2666_v10  ;;  %v3645_v17 = vpop.f32.mrb[85].mxu1  ;;  %v1128_v10 = vsel %vm442_vm4, %v4128_v63, 0.0  ;;  %v1131_v63 = vsel %vm442_vm4, %v4134_v3, 0.0  ;;  %v2460_v3 = vsel %vm442_vm4, %v4372_v61, 0.0 }
 0xcca   : > { %v2669_v19 = vpop.f32.mrb[86].mxu1  ;;  %v1134_v17 = vsel %vm442_vm4, %v4143_v12, 0.0  ;;  %v1461_v12 = vsel %vm442_vm4, %v4190_v23, 0.0  ;;  %v2466_v23 = vsel %vm442_vm4, %v4387_v16, 0.0 }
 0xccb   : > { %v3646_v22 = vpop.f32.mrb[87].mxu1  ;;  %v2775_v25 = vsel %vm442_vm4, %v2772_v13, -inf  ;;  %v798_v19 = vsel %vm442_vm4, %v4075_v57, 0.0  ;;  %v1800_v57 = vsel %vm442_vm4, %v4266_v2, 0.0  ;;  %v2127_v2 = vsel %vm442_vm4, %v4313_v42, 0.0 }
 0xccc   : > { %2776 = vmax.xlane.f32.xlu1 %v2775_v25 }
 0xccd   : > { %v2716_v27 = vpop.f32.mrb[88].mxu0 }
 0xcce   : > { %v2773_v31 = vmul.f32 0.5, %v2716_v27  ;;  %v3651_v35 = vpop.f32.mrb[89].mxu0 }
 0xccf   : > { %v2719_v37 = vpop.f32.mrb[90].mxu0 }
 0xcd0   : > { %v3652_v41 = vpop.f32.mrb[91].mxu0  ;;  %v2778_v43 = vsel %vm442_vm4, %v2773_v31, -inf  ;;  %v2766_v45 = vpop.f32.mrb[88].mxu1 }
 0xcd1   : > { %2779 = vmax.xlane.f32.xlu0 %v2778_v43  ;;  %v2774_v53 = vmul.f32 0.5, %v2766_v45  ;;  %v3657_v54 = vpop.f32.mrb[89].mxu1 }
 0xcd2   : > { %v2769_v8 = vpop.f32.mrb[90].mxu1 }
 0xcd3   : > { %v3658_v5 = vpop.f32.mrb[91].mxu1  ;;  %v2781_v1 = vsel %vm442_vm4, %v2774_v53, -inf }
 0xcd5   : > { %2782 = vmax.xlane.f32.xlu0 %v2781_v1  ;;  %v461_v1 = vsel %vm442_vm4, %v4004_v51, 0.0 }
 0xcdd   : > { %2901 = vrot.lane.b32.xlu1 %v3955_v6, %s3894_s24  ;;  %v1464_v6 = vsel %vm442_vm4, %v4198_v29, 0.0  ;;  %v1467_v29 = vsel %vm442_vm4, %v4205_v34, 0.0  ;;  %v2133_v34 = vsel %vm442_vm4, %v4328_v56, 0.0 }
 0xceb   : > { %2853 = vrot.lane.b32.xlu0 %v3961_v11, %s3894_s24  ;;  %v801_v11 = vsel %vm442_vm4, %v4082_v62, 0.0  ;;  %v2130_v62 = vsel %vm442_vm4, %v4321_v47, 0.0  ;;  %v2463_v47 = vsel %vm442_vm4, %v4378_v44, 0.0 }
 0xd01   : > { %796 = vadd.xlane.f32.xlu1 %v795_v7 }
 0xd05   : > { %1129 = vadd.xlane.f32.xlu1 %v1128_v10 }
 0xd09   : > { %1135 = vadd.xlane.f32.xlu1 %v1134_v17  ;;  %v464_v17 = vsel %vm442_vm4, %v4011_v55, 0.0 }
 0xd0a   : > { %799 = vadd.xlane.f32.xlu0 %v798_v19 }
 0xd0d   : > { %1465 = vadd.xlane.f32.xlu1 %v1464_v6 }
 0xd0e   : > { %802 = vadd.xlane.f32.xlu0 %v801_v11 }
 0xd11   : > { %1795 = vadd.xlane.f32.xlu1 %v1794_v52 }
 0xd12   : > { %1132 = vadd.xlane.f32.xlu0 %v1131_v63 }
 0xd15   : > { %1801 = vadd.xlane.f32.xlu1 %v1800_v57 }
 0xd16   : > { %1462 = vadd.xlane.f32.xlu0 %v1461_v12 }
 0xd19   : > { %2131 = vadd.xlane.f32.xlu1 %v2130_v62 }
 0xd1a   : > { %1468 = vadd.xlane.f32.xlu0 %v1467_v29 }
 0xd1d   : > { %2461 = vadd.xlane.f32.xlu1 %v2460_v3 }
 0xd1e   : > { %1798 = vadd.xlane.f32.xlu0 %v1797_v49 }
 0xd21   : > { %2467 = vadd.xlane.f32.xlu1 %v2466_v23 }
 0xd22   : > { %2128 = vadd.xlane.f32.xlu0 %v2127_v2 }
 0xd26   : > { %2134 = vadd.xlane.f32.xlu0 %v2133_v34 }
 0xd2a   : > { %2464 = vadd.xlane.f32.xlu0 %v2463_v47 }
 0xd59   : > { %v2777_v61 = vpop.xlane.xlu1 %2776 }
 0xd5a   : > { %v2784_v22 = vsub.f32 %v2772_v13, %v2777_v61 }
 0xd5c   : > { %v2787_v60 = vmul.f32 1.442695, %v2784_v22 }
 0xd5d   : > { %v2902_v45 = vpop.permute.xlu1 %2901 }
 0xd5e   : > { %3808 = vpow2.f32 %v2787_v60  ;;  %v2780_v25 = vpop.xlane.xlu0 %2779  ;;  %v2907_v13 = vsel %vm478_vm3, %v2902_v45, 0 }
 0xd5f   : > { %v2785_v27 = vsub.f32 %v2773_v31, %v2780_v25 }
 0xd61   : > { %v2789_v16 = vmul.f32 1.442695, %v2785_v27 }
 0xd62   : > { %v2783_v35 = vpop.xlane.xlu0 %2782 }
 0xd63   : > { %3810 = vpow2.f32 %v2789_v16  ;;  %v2786_v37 = vsub.f32 %v2774_v53, %v2783_v35 }
 0xd65   : > { %v2791_v42 = vmul.f32 1.442695, %v2786_v37 }
 0xd66   : > { %v2854_v41 = vpop.permute.xlu0 %2853 }
 0xd67   : > { %3812 = vpow2.f32 %v2791_v42  ;;  %v2859_v56 = vsel %vm478_vm3, %v2854_v41, 0 }
 0xd68   : > { %v3809_v43 = vpop.eup %3808  ;;  %3666 = vmatpush3.bf16.msra.mxu1 %v2859_v56 }
 0xd69   : > { %v2793_v44 = vsel %vm442_vm4, %v3809_v43, 0.0  ;;  %v2802_v54 = vpack.c.bf16 %v3809_v43, %v3809_v43 }
 0xd6a   : > { %2794 = vadd.xlane.f32.xlu0 %v2793_v44 }
 0xd6b   : > { %3662 = vmatmul.mubr.msk.bf16.vlgmr.msra.gmra.mrb[92].mxu0 %vm442_vm4, %v2802_v54 }
 0xd6c   : > { %3672 = vmatpush3.bf16.msra.mxu0 %v2907_v13  ;;  %3673 = vmatprep.mubr.msk.bf16.mxu0 %vm3871_vm1, %v3870_v4  ;;  %v467_v4 = vsel %vm442_vm4, %v4020_v59, 0.0 }
 0xd6d   : > { %v3811_v31 = vpop.eup %3810 }
 0xd6e   : > { %v2796_v53 = vsel %vm442_vm4, %v3811_v31, 0.0  ;;  %v2803_v8 = vpack.c.bf16 %v3811_v31, %v3811_v31 }
 0xd6f   : > { %2797 = vadd.xlane.f32.xlu1 %v2796_v53 }
 0xd70   : > { %3668 = vmatmul.mubr.msk.bf16.vlgmr.msra.gmra.mrb[92].mxu1 %vm442_vm4, %v2803_v8 }
 0xd71   : > { %v3813_v5 = vpop.eup %3812 }
 0xd72   : > { %v2799_v7 = vsel %vm442_vm4, %v3813_v5, 0.0  ;;  %v2804_v10 = vpack.c.bf16 %v3813_v5, %v3813_v5 }
 0xd73   : > { %462 = vadd.xlane.f32.xlu1 %v461_v1  ;;  %2800 = vadd.xlane.f32.xlu0 %v2799_v7 }
 0xd74   : > { %3674 = vmatmul.mubr.msk.bf16.vlgmr.msra.gmra.mrb[96].mxu0 %vm442_vm4, %v2804_v10 }
 0xd77   : > { %468 = vadd.xlane.f32.xlu1 %v467_v4  ;;  %465 = vadd.xlane.f32.xlu0 %v464_v17 }
 0xd8e   : > { %v797_v19 = vpop.xlane.xlu1 %796 }
 0xd8f   : > { %3814 = vrcp.f32 %v797_v19 }
 0xd92   : > { %v1130_v6 = vpop.xlane.xlu1 %1129 }
 0xd96   : > { %v1136_v11 = vpop.xlane.xlu1 %1135 }
 0xd97   : > { %v800_v51 = vpop.xlane.xlu0 %799 }
 0xd98   : > { %3816 = vrcp.f32 %v800_v51 }
 0xd99   : > { %3818 = vrcp.f32 %v1136_v11  ;;  %v3815_v62 = vpop.eup %3814 }
 0xd9a   : > { %v1466_v52 = vpop.xlane.xlu1 %1465  ;;  %v954_v3 = vmul.f32 %v3815_v62, %v4109_v15 }
 0xd9b   : > { %v803_v63 = vpop.xlane.xlu0 %802 }
 0xd9c   : > { %3820 = vrcp.f32 %v803_v63 }
 0xd9d   : > { %3822 = vrcp.f32 %v1130_v6 }
 0xd9e   : > { %v1796_v57 = vpop.xlane.xlu1 %1795 }
 0xd9f   : > { %v1133_v12 = vpop.xlane.xlu0 %1132 }
 0xda0   : > { %3824 = vrcp.f32 %v1133_v12 }
 0xda1   : > { %3826 = vrcp.f32 %v1466_v52 }
 0xda2   : > { %v3817_v59 = vpop.eup %3816  ;;  %v1802_v55 = vpop.xlane.xlu1 %1801 }
 0xda3   : > { %v1463_v29 = vpop.xlane.xlu0 %1462  ;;  %v955_v49 = vmul.f32 %v3817_v59, %v4111_v20  ;;  %v3819_v23 = vpop.eup %3818 }
 0xda4   : > { %3828 = vrcp.f32 %v1463_v29  ;;  %v1289_v25 = vmul.f32 %v3819_v23, %v4174_v36 }
 0xda5   : > { %v3725_v2 = vpack.i.bf16 %v955_v49, %v954_v3 }
 0xda6   : > { %v3821_v34 = vpop.eup %3820  ;;  %v2132_v47 = vpop.xlane.xlu1 %2131 }
 0xda7   : > { %3726 = vrot.lane.b32.xlu0 %v3725_v2, %s3895_s25  ;;  %v1469_v61 = vpop.xlane.xlu0 %1468  ;;  %v956_v22 = vmul.f32 %v3821_v34, %v4113_v24  ;;  %v3823_v60 = vpop.eup %3822 }
 0xda8   : > { %3830 = vrcp.f32 %v1469_v61  ;;  %v1287_v20 = vmul.f32 %v3823_v60, %v4170_v28 }
 0xda9   : > { %3832 = vrcp.f32 %v1796_v57  ;;  %2962 = vrot.lane.b32.xlu1 %v956_v22, %s3895_s25 }
 0xdaa   : > { %v3825_v27 = vpop.eup %3824  ;;  %3834 = vrcp.f32 %v1802_v55  ;;  %v2462_v37 = vpop.xlane.xlu1 %2461 }
 0xdab   : > { %2974 = vrot.lane.b32.xlu0 %v1289_v25, %s3896_s26  ;;  %v1799_v15 = vpop.xlane.xlu0 %1798  ;;  %v1288_v16 = vmul.f32 %v3825_v27, %v4172_v32  ;;  %v3827_v35 = vpop.eup %3826 }
 0xdac   : > { %3836 = vrcp.f32 %v1799_v15  ;;  %v1621_v36 = vmul.f32 %v3827_v35, %v4234_v50 }
 0xdad   : > { %v3730_v42 = vpack.i.bf16 %v1288_v16, %v1287_v20  ;;  %3838 = vrcp.f32 %v2132_v47 }
 0xdae   : > { %v3829_v24 = vpop.eup %3828  ;;  %v2468_v54 = vpop.xlane.xlu1 %2467 }
 0xdaf   : > { %3731 = vrot.lane.b32.xlu1 %v3730_v42, %s3896_s26  ;;  %v2129_v41 = vpop.xlane.xlu0 %2128  ;;  %v1620_v56 = vmul.f32 %v3829_v24, %v4232_v46 }
 0xdb0   : > { %3840 = vrcp.f32 %v2129_v41 }
 0xdb1   : > { %v3735_v43 = vpack.i.bf16 %v1621_v36, %v1620_v56 }
 0xdb2   : > { %v3831_v45 = vpop.eup %3830 }
 0xdb3   : > { %v3833_v44 = vpop.eup %3832  ;;  %3736 = vrot.lane.b32.xlu1 %v3735_v43, %s3897_s27  ;;  %v2135_v28 = vpop.xlane.xlu0 %2134  ;;  %v1622_v32 = vmul.f32 %v3831_v45, %v4236_v58 }
 0xdb4   : > { %v3835_v13 = vpop.eup %3834  ;;  %3842 = vrcp.f32 %v2135_v28  ;;  %v1953_v50 = vmul.f32 %v3833_v44, %v4293_v26 }
 0xdb5   : > { %3844 = vrcp.f32 %v2462_v37  ;;  %2986 = vrot.lane.b32.xlu0 %v1622_v32, %s3897_s27  ;;  %v1955_v46 = vmul.f32 %v3835_v13, %v4297_v39 }
 0xdb6   : > { %v3837_v31 = vpop.eup %3836  ;;  %3846 = vrcp.f32 %v2468_v54 }
 0xdb7   : > { %v2465_v53 = vpop.xlane.xlu0 %2464  ;;  %v1954_v8 = vmul.f32 %v3837_v31, %v4295_v33  ;;  %v3839_v5 = vpop.eup %3838 }
 0xdb8   : > { %3848 = vrcp.f32 %v2465_v53  ;;  %v2287_v10 = vmul.f32 %v3839_v5, %v4357_v30  ;;  %v3764_v30 = vld [vmem:[%s4536_s2] sm:$0xff]  }
 0xdb9   : > { %2998 = vrot.lane.b32.xlu0 %v1955_v46, %s3898_s28  ;;  %v3740_v1 = vpack.i.bf16 %v1954_v8, %v1953_v50  ;;  %3677 = vmatprep.subr.bf16.mxu1 %v3764_v30 }
 0xdba   : > { %v3841_v7 = vpop.eup %3840  ;;  %3678 = vmatpush3.bf16.msra.mxu1 %v3764_v30 }
 0xdbb   : > { %3741 = vrot.lane.b32.xlu1 %v3740_v1, %s3898_s28  ;;  %v2286_v58 = vmul.f32 %v3841_v7, %v4355_v21 }
 0xdbd   : > { %v3745_v4 = vpack.i.bf16 %v2287_v10, %v2286_v58 }
 0xdbe   : > { %v3843_v17 = vpop.eup %3842 }
 0xdbf   : > { %v3845_v19 = vpop.eup %3844  ;;  %3746 = vrot.lane.b32.xlu1 %v3745_v4, %s3899_s29  ;;  %v2288_v26 = vmul.f32 %v3843_v17, %v4359_v38 }
 0xdc0   : > { %v3847_v39 = vpop.eup %3846  ;;  %v2619_v11 = vmul.f32 %v3845_v19, %v4412_v40  ;;  %v3765_v40 = vld [vmem:[%s4536_s2 + $0x8] sm:$0xff]  }
 0xdc1   : > { %3010 = vrot.lane.b32.xlu0 %v2288_v26, %s3899_s29  ;;  %v2621_v6 = vmul.f32 %v3847_v39, %v4416_v0  ;;  %3679 = vmatprep.subr.bf16.mxu1 %v3765_v40 }
 0xdc2   : > { %v3849_v33 = vpop.eup %3848  ;;  %3680 = vmatpush3.bf16.msra.mxu1 %v3765_v40 }
 0xdc3   : > { %v2620_v51 = vmul.f32 %v3849_v33, %v4414_v48 }
 0xdc5   : > { %3022 = vrot.lane.b32.xlu0 %v2621_v6, %s3900_s30  ;;  %v3750_v21 = vpack.i.bf16 %v2620_v51, %v2619_v11 }
 0xdc7   : > { %3751 = vrot.lane.b32.xlu1 %v3750_v21, %s3900_s30 }
 0xdf7   : > { %v2795_v38 = vpop.xlane.xlu0 %2794 }
 0xdf8   : > { %3850 = vrcp.f32 %v2795_v38 }
 0xdfc   : > { %v2798_v52 = vpop.xlane.xlu1 %2797 }
 0xdfd   : > { %3852 = vrcp.f32 %v2798_v52 }
 0xe00   : > { %v2801_v63 = vpop.xlane.xlu0 %2800  ;;  %v463_v15 = vpop.xlane.xlu1 %462 }
 0xe01   : > { %3854 = vrcp.f32 %v2801_v63 }
 0xe02   : > { %v3851_v62 = vpop.eup %3850 }
 0xe04   : > { %v469_v20 = vpop.xlane.xlu1 %468  ;;  %v466_v16 = vpop.xlane.xlu0 %465 }
 0xe05   : > { %3856 = vrcp.f32 %v469_v20 }
 0xe06   : > { %3858 = vrcp.f32 %v463_v15 }
 0xe07   : > { %v3853_v59 = vpop.eup %3852  ;;  %3860 = vrcp.f32 %v466_v16 }
 0xe0b   : > { %v3855_v47 = vpop.eup %3854 }
 0xe0f   : > { %v3857_v45 = vpop.eup %3856 }
 0xe10   : > { %v3859_v44 = vpop.eup %3858  ;;  %v623_v13 = vmul.f32 %v3857_v45, %v4051_v18 }
 0xe11   : > { %v3861_v28 = vpop.eup %3860  ;;  %v621_v50 = vmul.f32 %v3859_v44, %v4047_v9 }
 0xe12   : > { %v622_v7 = vmul.f32 %v3861_v28, %v4049_v14 }
 0xe19   : > { %v3727_v37 = vpop.permute.xlu0 %3726 }
 0xe1a   : > { %v3728_v32 = vunpack.i.l.bf16 %v3727_v37  ;;  %v3729_v53 = vunpack.i.h.bf16 %v3727_v37 }
 0xe1b   : > { %v2963_v35 = vpop.permute.xlu1 %2962 }
 0xe1c   : > { %v3041_v8 = vsel %vm296_vm2, %v623_v13, %v2963_v35  ;;  %v3039_v17 = vsel %vm296_vm2, %v621_v50, %v3728_v32  ;;  %v3040_v26 = vsel %vm296_vm2, %v622_v7, %v3729_v53 }
 0xe1d   : > { %v2975_v24 = vpop.permute.xlu0 %2974 }
 0xe1e   : > { %v3044_v39 = vsel %vm442_vm4, %v3041_v8, %v2975_v24 }
 0xe21   : > { %v3732_v42 = vpop.permute.xlu1 %3731 }
 0xe22   : > { %v3733_v46 = vunpack.i.l.bf16 %v3732_v42  ;;  %v3734_v5 = vunpack.i.h.bf16 %v3732_v42 }
 0xe24   : > { %v3042_v9 = vsel %vm442_vm4, %v3039_v17, %v3733_v46  ;;  %v3043_v6 = vsel %vm442_vm4, %v3040_v26, %v3734_v5 }
 0xe25   : > { %v3737_v41 = vpop.permute.xlu1 %3736 }
 0xe26   : > { %v3738_v1 = vunpack.i.l.bf16 %v3737_v41  ;;  %v3739_v58 = vunpack.i.h.bf16 %v3737_v41 }
 0xe27   : > { %v2987_v56 = vpop.permute.xlu0 %2986 }
 0xe28   : > { %v3046_v14 = vsel %vm3045_vm5, %v3042_v9, %v3738_v1  ;;  %v3047_v30 = vsel %vm3045_vm5, %v3043_v6, %v3739_v58  ;;  %v3048_v38 = vsel %vm3045_vm5, %v3044_v39, %v2987_v56 }
 0xe2b   : > { %v2999_v43 = vpop.permute.xlu0 %2998 }
 0xe2c   : > { %v3052_v63 = vsel %vm3049_vm6, %v3048_v38, %v2999_v43 }
 0xe2d   : > { %v3742_v36 = vpop.permute.xlu1 %3741 }
 0xe2e   : > { %v3743_v10 = vunpack.i.l.bf16 %v3742_v36  ;;  %v3744_v19 = vunpack.i.h.bf16 %v3742_v36 }
 0xe30   : > { %v3050_v52 = vsel %vm3049_vm6, %v3046_v14, %v3743_v10  ;;  %v3051_v40 = vsel %vm3049_vm6, %v3047_v30, %v3744_v19 }
 0xe31   : > { %v3747_v54 = vpop.permute.xlu1 %3746 }
 0xe32   : > { %v3748_v18 = vunpack.i.l.bf16 %v3747_v54  ;;  %v3749_v33 = vunpack.i.h.bf16 %v3747_v54 }
 0xe33   : > { %v3011_v31 = vpop.permute.xlu0 %3010 }
 0xe37   : > { %v3023_v11 = vpop.permute.xlu0 %3022 }
 0xe39   : > { %v3752_v4 = vpop.permute.xlu1 %3751 }
 0xe3a   : > { %v3754_v51 = vunpack.i.h.bf16 %v3752_v4  ;;  %v3753_v21 = vunpack.i.l.bf16 %v3752_v4 }
 0xe3e   : > { %v2847_v48 = vpop.f32.mrb[92].mxu0 }
 0xe3f   : > { %v3663_v0 = vpop.f32.mrb[93].mxu0  ;;  %v2952_v29 = vmul.f32 %v3851_v62, %v2847_v48  ;;  %v3054_v48 = vsel %vm3053_vm7, %v3050_v52, %v3748_v18 }
 0xe40   : > { %v2850_v57 = vpop.f32.mrb[94].mxu0 }
 0xe41   : > { %v3664_v12 = vpop.f32.mrb[95].mxu0  ;;  %v3055_v57 = vsel %vm3053_vm7, %v3051_v40, %v3749_v33 }
 0xe42   : > { %v3056_v12 = vsel %vm3053_vm7, %v3052_v63, %v3011_v31 }
 0xe43   : > { %v2895_v55 = vpop.f32.mrb[92].mxu1 }
 0xe44   : > { %v2953_v3 = vmul.f32 %v3853_v59, %v2895_v55  ;;  %v3669_v49 = vpop.f32.mrb[93].mxu1  ;;  %v3060_v55 = vsel %vm3057_vm8, %v3056_v12, %v3023_v11 }
 0xe45   : > { %v2898_v23 = vpop.f32.mrb[94].mxu1 }
 0xe46   : > { %v3755_v2 = vpack.i.bf16 %v2953_v3, %v2952_v29  ;;  %v3670_v34 = vpop.f32.mrb[95].mxu1  ;;  %v3058_v29 = vsel %vm3057_vm8, %v3054_v48, %v3753_v21  ;;  %v3059_v3 = vsel %vm3057_vm8, %v3055_v57, %v3754_v51 }
 0xe47   : > { %v2943_v61 = vpop.f32.mrb[96].mxu0 }
 0xe48   : > { %v2954_v22 = vmul.f32 %v3855_v47, %v2943_v61  ;;  %v3675_v60 = vpop.f32.mrb[97].mxu0  ;;  %3756 = vrot.lane.b32.xlu1 %v3755_v2, %s3901_s9 }
 0xe49   : > { %v2946_v25 = vpop.f32.mrb[98].mxu0 }
 0xe4a   : > { %v3676_v27 = vpop.f32.mrb[99].mxu0  ;;  %3034 = vrot.lane.b32.xlu0 %v2954_v22, %s3901_s9  ;;  %v3267_v22 = vld [vmem:[%s4537_s3] ss:$0 sm:$0xff] }
 0xeba   : > { %v3757_v0 = vpop.permute.xlu1 %3756 }
 0xebb   : > { %v3759_v62 = vunpack.i.h.bf16 %v3757_v0  ;;  %v3758_v59 = vunpack.i.l.bf16 %v3757_v0 }
 0xebc   : > { %v3035_v49 = vpop.permute.xlu0 %3034 }
 0xebd   : > { %v3062_v23 = vsel %vm3061_vm9, %v3058_v29, %v3758_v59  ;;  %v3063_v2 = vsel %vm3061_vm9, %v3059_v3, %v3759_v62  ;;  %v3064_v34 = vsel %vm3061_vm9, %v3060_v55, %v3035_v49 }
 0xebe   : > { %v3065_v47 = vpack.c.bf16 %v3063_v2, %v3062_v23  ;;  %v3066_v61 = vpack.c.bf16 %v3064_v34, %v3064_v34 }
 0xec0   : > { %3681 = vmatprep.mubr.msk.bf16.mxu1 %vm229_vm0, %v3065_v47 }
 0xec1   : > { %3682 = vmatmul.mubr.msk.bf16.vlgmr.msra.gmra.mrb[96].mxu1 %vm229_vm0, %v3066_v61 }
 0xf94   : > { %v3683_v60 = vpop.f32.mrb[96].mxu1 }
 0xf95   : > { %v3139_v25 = vadd.f32 %v3683_v60, %v3267_v22  ;;  %v3130_v27 = vpop.f32.mrb[97].mxu1 }
 0xf96   : > { %v3131_v15 = vadd.f32 %v3267_v22, %v3130_v27  ;;  %v3684_v20 = vpop.f32.mrb[98].mxu1 }
 0xf97   : > { %3146 = vst.msk [vmem:[%s199_s16 + $0x10] sm:$0xff] %vm229_vm0, %v3139_v25  ;;  %v3133_v16 = vpop.f32.mrb[99].mxu1 }
 0xf98   : > { %3144 = vst.msk [vmem:[%s199_s16] sm:$0xff] %vm229_vm0, %v3131_v15  ;;  %v3134_v35 = vadd.f32 %v3267_v22, %v3133_v16 }
 0xf9a   : > { %3145 = vst.msk [vmem:[%s199_s16 + $0x8] sm:$0xff] %vm229_vm0, %v3134_v35 }
 0xf9b PF: > { %s14_s15 = sadd.s32 1, %s3868_s15  }
 0xf9c   : > { %p11_p4 = scmp.ge.s32.totalorder %s14_s15, 4  }
 0xf9e   :  { %13 = sbr.rel (!%p11_p4) target bundleno = 1 (0x1), region = 66 }

</bundles_post_ra>
